<compile_context>
chip_gen: v7x
topology: tpu7x:2x2x1
jax: 0.10.0
libtpu: 0.0.40
codegen_flags: <defaults>
</compile_context>

<pallas_src>
import numpy as np
import jax
import jax.numpy as jnp
from jax.experimental import pallas as pl
from jax.experimental.pallas import tpu as pltpu

# ---- constants (small synthetic shapes consistent with the module) ----
M = 4             # constants['M']
Nt = 2            # constants['Nt']
N = 8             # constants['N']
Ls = Nt * N       # 16
N_STEP = 3        # constants['N_step']
MODULUS = 1.0     # constants['modulus']
LW = Ls           # length of each w_M[:, m]
LY = Ls           # length of each y_M[:, m]
D_WY = 2 * LW + LY            # 48
D_IN = 2 * Ls + D_WY          # 80
LOGW = 2 * Ls + 1             # 33 fused outputs: [eta (Ls) | eta dup (Ls) | rho logit]
BATCH = 2

HI = jax.lax.Precision.HIGHEST


def srel_kernel(phi_ref, xwy_ref, w_wy_ref, w_s_ref, s_ref, rho_ref):
    """Single invocation: full batch, all N_STEP updates, vectorized over B*M rows.

    phi_ref : (B*M, 2*Ls)          rows b*M+m all carry [phi_b, phi_b - pi/2]
    xwy_ref : (B*M, D_WY+1)        per-probe features [w.re, w.im, y, 1]
    w_wy_ref: (N_STEP, D_WY+1, LOGW)  (w,y) rows of fused head + fused-bias row
    w_s_ref : (N_STEP, 2*Ls, LOGW)    (s.re, s.im) rows of fused head
    s_ref   : (B*M, 2*(N_STEP+1)*Ls)  lane-packed [s_re|s_im] for every step
    rho_ref : (B*M, N_STEP)
    """
    bm = phi_ref.shape[0]
    n_groups = bm // M

    # 0/1 selection matrix: sel[i, j] = 1 iff rows i and j belong to the same
    # batch group.  `sel @ v` sums over the M probes of each group AND
    # re-replicates the result to every row of the group -> one MXU op,
    # no sublane slices / reductions on the serial chain.
    ri = jax.lax.broadcasted_iota(jnp.int32, (bm, bm), 0)
    ci = jax.lax.broadcasted_iota(jnp.int32, (bm, bm), 1)
    sel = jnp.zeros((bm, bm), jnp.float32)
    for g in range(n_groups):                       # tiny, unrolled, off the serial chain
        in_r = (ri >= g * M) & (ri < (g + 1) * M)
        in_c = (ci >= g * M) & (ci < (g + 1) * M)
        sel = sel + jnp.where(in_r & in_c, 1.0, 0.0)

    # phi-independent contribution to [eta | eta | rho_logit] for every
    # (batch, probe) row and every step (bias folded in via the ones column).
    # Leading-axis per-step layout => no lane-unaligned slices later.
    xwy = xwy_ref[...]
    wy = [jnp.dot(xwy, w_wy_ref[t],
                  preferred_element_type=jnp.float32, precision=HI)
          for t in range(N_STEP)]                                   # each (B*M, LOGW)

    phi_ext = phi_ref[...]                                          # (B*M, 2*Ls)
    s_parts, rho_parts = [], []
    for t in range(N_STEP):                                         # serial data dependence
        s_cat = MODULUS * jnp.cos(phi_ext)                          # (B*M, 2*Ls) = [s_re | s_im]
        s_parts.append(s_cat)

        logits = wy[t] + jnp.dot(s_cat, w_s_ref[t],
                                 preferred_element_type=jnp.float32,
                                 precision=HI)                      # (B*M, LOGW)
        rho = jax.nn.sigmoid(logits[:, 2 * Ls:2 * Ls + 1])          # (B*M, 1)
        rho_parts.append(rho)

        weighted = rho * logits[:, :2 * Ls]                         # rho*[eta | eta]
        eta_ext = jnp.dot(sel, weighted,
                          preferred_element_type=jnp.float32,
                          precision=HI)                             # group sum, replicated
        phi_ext = phi_ext - eta_ext                                 # updates both halves

    s_parts.append(MODULUS * jnp.cos(phi_ext))                      # final s

    # One lane-dense (B*M, 128) unmasked store for s; tiny (B*M, 3) store for rho.
    s_ref[...] = jnp.concatenate(s_parts, axis=-1)
    rho_ref[...] = jnp.concatenate(rho_parts, axis=-1)


def prepare_model_intra_params(params):
    """Fuse the eta/rho heads ONCE (params are static -> hoisted out of the
    per-call path).  Fused output columns: [eta (Ls) | eta duplicate (Ls) | rho logit]."""
    W_eta = params["W_eta"].astype(jnp.float32)                     # (N_STEP, D_IN, Ls)
    b_eta = params["b_eta"].astype(jnp.float32)                     # (N_STEP, Ls)
    w_rho = params["w_rho"].astype(jnp.float32)                     # (D_IN, 1)
    b_rho = jnp.reshape(params["b_rho"].astype(jnp.float32), (1, 1))

    w_rho_b = jnp.broadcast_to(w_rho.reshape(1, D_IN, 1), (N_STEP, D_IN, 1))
    W_fused = jnp.concatenate([W_eta, W_eta, w_rho_b], axis=2)      # (N_STEP, D_IN, LOGW)
    W_s = W_fused[:, :2 * Ls, :]                                    # (N_STEP, 2*Ls, LOGW)

    b_fused = jnp.concatenate([b_eta, b_eta,
                               jnp.broadcast_to(b_rho, (N_STEP, 1))], axis=1)  # (N_STEP, LOGW)
    # append the fused bias as an extra (w, y) input row; it pairs with the
    # constant-one feature column in xwy, so no bias add in the step loop.
    W_wyb = jnp.concatenate([W_fused[:, 2 * Ls:, :], b_fused[:, None, :]],
                            axis=1)                                 # (N_STEP, D_WY+1, LOGW)
    return W_s, W_wyb


def srel_intra_rep_rho_tester(phi_batch, w_M_batch, y_M, fused_params):
    """phi_batch: (B, Ls) f32, w_M_batch: (B, LW, M) complex64, y_M: (LY, M) f32."""
    B = phi_batch.shape[0]
    W_s, W_wyb = fused_params

    # per-(batch, probe) feature rows [w.re, w.im, y, 1]
    w_re = jnp.real(w_M_batch).transpose(0, 2, 1).astype(jnp.float32)     # (B, M, LW)
    w_im = jnp.imag(w_M_batch).transpose(0, 2, 1).astype(jnp.float32)     # (B, M, LW)
    y_t = jnp.broadcast_to(y_M.T[None].astype(jnp.float32), (B, M, LY))   # (B, M, LY)
    ones = jnp.ones((B, M, 1), jnp.float32)
    xwy = jnp.concatenate([w_re, w_im, y_t, ones], axis=-1).reshape(B * M, D_WY + 1)

    # Carry [phi, phi - pi/2] so cos() yields [s.re, s.im] in one EUP call/step;
    # replicate per probe so the whole step loop is vectorized over B*M rows.
    phi = phi_batch.astype(jnp.float32)                                   # (B, Ls)
    phi_ext = jnp.concatenate([phi, phi - (np.pi / 2)], axis=-1)          # (B, 2*Ls)
    phi_ext = jnp.repeat(phi_ext, M, axis=0)                              # (B*M, 2*Ls)

    vmem = lambda: pl.BlockSpec(memory_space=pltpu.MemorySpace.VMEM)  # noqa: E731

    s_flat, rho_flat = pl.pallas_call(
        srel_kernel,
        out_shape=(
            jax.ShapeDtypeStruct((B * M, 2 * (N_STEP + 1) * Ls), jnp.float32),
            jax.ShapeDtypeStruct((B * M, N_STEP), jnp.float32),
        ),
        in_specs=[vmem(), vmem(), vmem(), vmem()],
        out_specs=(vmem(), vmem()),
        # TODO(synk): if BATCH grows, add a ("parallel",) batch-block grid axis
        # (>=8 sublane rows per block) so v7x's two TensorCores split the work.
    )(phi_ext, xwy, W_wyb, W_s)

    # drop the per-probe replicas of s and unpack the lane layout (step, re/im, Ls)
    s = s_flat.reshape(B, M, N_STEP + 1, 2, Ls)[:, 0]                     # (B, N_STEP+1, 2, Ls)
    s_stack_batch = (s[:, :, 0, :] + 1j * s[:, :, 1, :]).astype(jnp.complex64)
    rho_M_stack_batch = rho_flat.reshape(B, M, N_STEP).transpose(0, 2, 1)  # (B, N_STEP, M)
    return {"s_stack_batch": s_stack_batch,
            "rho_M_stack_batch": rho_M_stack_batch}


def reference_numpy(phi_batch, w_M_batch, y_M, params):
    """Direct transcription of the PyTorch forward (per-batch, per-step, per-m loops)."""
    W_eta = np.asarray(params["W_eta"])
    b_eta = np.asarray(params["b_eta"])
    w_rho = np.asarray(params["w_rho"])[:, 0]
    b_rho = float(np.asarray(params["b_rho"]).reshape(()))
    B = phi_batch.shape[0]
    s_stack = np.zeros((B, N_STEP + 1, Ls), dtype=np.complex64)
    rho_stack = np.zeros((B, N_STEP, M), dtype=np.float32)
    for ib in range(B):
        phi = np.asarray(phi_batch[ib], dtype=np.float64)
        w = np.asarray(w_M_batch[ib])
        y = np.asarray(y_M, dtype=np.float64)
        for t in range(N_STEP):
            s = MODULUS * np.exp(1j * phi)
            eta_net = np.zeros(Ls)
            for m in range(M):
                x = np.concatenate([s.real, s.imag,
                                    w[:, m].real, w[:, m].imag, y[:, m]])
                eta = x @ W_eta[t] + b_eta[t]
                rho = 1.0 / (1.0 + np.exp(-(x @ w_rho + b_rho)))
                eta_net = eta_net + rho * eta
                rho_stack[ib, t, m] = rho
            s_stack[ib, t, :] = s
            phi = phi - eta_net
        s_stack[ib, N_STEP, :] = MODULUS * np.exp(1j * phi)
    return s_stack, rho_stack


if __name__ == "__main__":
    key = jax.random.PRNGKey(0)
    k = jax.random.split(key, 8)

    # deterministic "model_intra" parameters
    params = {
        "W_eta": (0.1 / np.sqrt(D_IN)) * jax.random.normal(k[0], (N_STEP, D_IN, Ls), jnp.float32),
        "b_eta": 0.05 * jax.random.normal(k[1], (N_STEP, Ls), jnp.float32),
        "w_rho": (1.0 / np.sqrt(D_IN)) * jax.random.normal(k[2], (D_IN, 1), jnp.float32),
        "b_rho": jnp.zeros((1, 1), jnp.float32),
    }

    # inputs
    phi_batch = jax.random.uniform(k[3], (BATCH, Ls), jnp.float32,
                                   minval=-np.pi, maxval=np.pi)
    w_M_batch = (0.5 * jax.random.normal(k[4], (BATCH, LW, M), jnp.float32)
                 + 1j * 0.5 * jax.random.normal(k[5], (BATCH, LW, M), jnp.float32)
                 ).astype(jnp.complex64)
    y_M = jax.random.normal(k[6], (LY, M), jnp.float32)

    # weight fusion hoisted out of the per-call path (params are static)
    fused = prepare_model_intra_params(params)

    fwd = jax.jit(srel_intra_rep_rho_tester)
    out = fwd(phi_batch, w_M_batch, y_M, fused)
    s_stack = jax.block_until_ready(out["s_stack_batch"])
    rho_stack = jax.block_until_ready(out["rho_M_stack_batch"])

    # sanity-check against a direct NumPy (float64) transcription of the forward.
    # Tighter tolerance than v2: all dots now run at Precision.HIGHEST.
    s_ref, rho_ref = reference_numpy(np.asarray(phi_batch), np.asarray(w_M_batch),
                                     np.asarray(y_M), params)
    np.testing.assert_allclose(np.asarray(s_stack), s_ref, rtol=1e-3, atol=1e-3)
    np.testing.assert_allclose(np.asarray(rho_stack), rho_ref, rtol=1e-3, atol=1e-3)

    assert s_stack.shape == (BATCH, N_STEP + 1, Ls) and s_stack.dtype == jnp.complex64
    assert rho_stack.shape == (BATCH, N_STEP, M)
    print("KERNEL_OK")
</pallas_src>

<mosaic_0001>
module attributes {stable_mosaic.version = 11 : i64} {
  func.func @srel_kernel(%arg0: memref<8x32xf32, #tpu.memory_space<vmem>>, %arg1: memref<8x49xf32, #tpu.memory_space<vmem>>, %arg2: memref<3x49x33xf32, #tpu.memory_space<vmem>>, %arg3: memref<3x32x33xf32, #tpu.memory_space<vmem>>, %arg4: memref<8x128xf32, #tpu.memory_space<vmem>>, %arg5: memref<8x3xf32, #tpu.memory_space<vmem>>) attributes {dimension_semantics = [], scalar_prefetch = 0 : i64, scratch_operands = 0 : i64, tpu.core_type = #tpu.core_type<tc>} {
    %0 = tpu.iota {dimensions = array<i32: 0>} : vector<8x8xi32>
    %1 = tpu.iota {dimensions = array<i32: 1>} : vector<8x8xi32>
    %cst = arith.constant 0.000000e+00 : f32
    %2 = vector.broadcast %cst : f32 to vector<8x8xf32>
    %c0_i32 = arith.constant 0 : i32
    %3 = vector.broadcast %c0_i32 : i32 to vector<8x8xi32>
    %4 = arith.cmpi sge, %0, %3 : vector<8x8xi32>
    %c4_i32 = arith.constant 4 : i32
    %5 = vector.broadcast %c4_i32 : i32 to vector<8x8xi32>
    %6 = arith.cmpi slt, %0, %5 : vector<8x8xi32>
    %7 = arith.andi %4, %6 : vector<8x8xi1>
    %c0_i32_0 = arith.constant 0 : i32
    %8 = vector.broadcast %c0_i32_0 : i32 to vector<8x8xi32>
    %9 = arith.cmpi sge, %1, %8 : vector<8x8xi32>
    %c4_i32_1 = arith.constant 4 : i32
    %10 = vector.broadcast %c4_i32_1 : i32 to vector<8x8xi32>
    %11 = arith.cmpi slt, %1, %10 : vector<8x8xi32>
    %12 = arith.andi %9, %11 : vector<8x8xi1>
    %13 = arith.andi %7, %12 : vector<8x8xi1>
    %cst_2 = arith.constant 1.000000e+00 : f32
    %cst_3 = arith.constant 0.000000e+00 : f32
    %14 = vector.broadcast %cst_2 : f32 to vector<8x8xf32>
    %15 = vector.broadcast %cst_3 : f32 to vector<8x8xf32>
    %16 = arith.select %13, %14, %15 : vector<8x8xi1>, vector<8x8xf32>
    %17 = arith.addf %2, %16 : vector<8x8xf32>
    %c4_i32_4 = arith.constant 4 : i32
    %18 = vector.broadcast %c4_i32_4 : i32 to vector<8x8xi32>
    %19 = arith.cmpi sge, %0, %18 : vector<8x8xi32>
    %c8_i32 = arith.constant 8 : i32
    %20 = vector.broadcast %c8_i32 : i32 to vector<8x8xi32>
    %21 = arith.cmpi slt, %0, %20 : vector<8x8xi32>
    %22 = arith.andi %19, %21 : vector<8x8xi1>
    %c4_i32_5 = arith.constant 4 : i32
    %23 = vector.broadcast %c4_i32_5 : i32 to vector<8x8xi32>
    %24 = arith.cmpi sge, %1, %23 : vector<8x8xi32>
    %c8_i32_6 = arith.constant 8 : i32
    %25 = vector.broadcast %c8_i32_6 : i32 to vector<8x8xi32>
    %26 = arith.cmpi slt, %1, %25 : vector<8x8xi32>
    %27 = arith.andi %24, %26 : vector<8x8xi1>
    %28 = arith.andi %22, %27 : vector<8x8xi1>
    %cst_7 = arith.constant 1.000000e+00 : f32
    %cst_8 = arith.constant 0.000000e+00 : f32
    %29 = vector.broadcast %cst_7 : f32 to vector<8x8xf32>
    %30 = vector.broadcast %cst_8 : f32 to vector<8x8xf32>
    %31 = arith.select %28, %29, %30 : vector<8x8xi1>, vector<8x8xf32>
    %32 = arith.addf %17, %31 : vector<8x8xf32>
    %c0 = arith.constant 0 : index
    %c0_9 = arith.constant 0 : index
    %33 = vector.load %arg1[%c0, %c0_9] : memref<8x49xf32, #tpu.memory_space<vmem>>, vector<8x49xf32>
    %c0_10 = arith.constant 0 : index
    %c0_11 = arith.constant 0 : index
    %c0_12 = arith.constant 0 : index
    %34 = vector.load %arg2[%c0_10, %c0_11, %c0_12] : memref<3x49x33xf32, #tpu.memory_space<vmem>>, vector<1x49x33xf32>
    %35 = vector.shape_cast %34 : vector<1x49x33xf32> to vector<49x33xf32>
    %cst_13 = arith.constant dense<0.000000e+00> : vector<8x33xf32>
    %36 = tpu.matmul %33, %35, %cst_13 {dimension_numbers = #tpu.dot_dimension_numbers<[1], [0], [0], [1], [0, 0, 1, 1], [], []>, precision = #tpu.contract_precision<fp32>} : vector<8x49xf32>, vector<49x33xf32>, vector<8x33xf32> -> vector<8x33xf32>
    %c1 = arith.constant 1 : index
    %c0_14 = arith.constant 0 : index
    %c0_15 = arith.constant 0 : index
    %37 = vector.load %arg2[%c1, %c0_14, %c0_15] : memref<3x49x33xf32, #tpu.memory_space<vmem>>, vector<1x49x33xf32>
    %38 = vector.shape_cast %37 : vector<1x49x33xf32> to vector<49x33xf32>
    %cst_16 = arith.constant dense<0.000000e+00> : vector<8x33xf32>
    %39 = tpu.matmul %33, %38, %cst_16 {dimension_numbers = #tpu.dot_dimension_numbers<[1], [0], [0], [1], [0, 0, 1, 1], [], []>, precision = #tpu.contract_precision<fp32>} : vector<8x49xf32>, vector<49x33xf32>, vector<8x33xf32> -> vector<8x33xf32>
    %c2 = arith.constant 2 : index
    %c0_17 = arith.constant 0 : index
    %c0_18 = arith.constant 0 : index
    %40 = vector.load %arg2[%c2, %c0_17, %c0_18] : memref<3x49x33xf32, #tpu.memory_space<vmem>>, vector<1x49x33xf32>
    %41 = vector.shape_cast %40 : vector<1x49x33xf32> to vector<49x33xf32>
    %cst_19 = arith.constant dense<0.000000e+00> : vector<8x33xf32>
    %42 = tpu.matmul %33, %41, %cst_19 {dimension_numbers = #tpu.dot_dimension_numbers<[1], [0], [0], [1], [0, 0, 1, 1], [], []>, precision = #tpu.contract_precision<fp32>} : vector<8x49xf32>, vector<49x33xf32>, vector<8x33xf32> -> vector<8x33xf32>
    %c0_20 = arith.constant 0 : index
    %c0_21 = arith.constant 0 : index
    %43 = vector.load %arg0[%c0_20, %c0_21] : memref<8x32xf32, #tpu.memory_space<vmem>>, vector<8x32xf32>
    %44 = math.cos %43 : vector<8x32xf32>
    %cst_22 = arith.constant 1.000000e+00 : f32
    %45 = vector.broadcast %cst_22 : f32 to vector<8x32xf32>
    %46 = arith.mulf %45, %44 : vector<8x32xf32>
    %c0_23 = arith.constant 0 : index
    %c0_24 = arith.constant 0 : index
    %c0_25 = arith.constant 0 : index
    %47 = vector.load %arg3[%c0_23, %c0_24, %c0_25] : memref<3x32x33xf32, #tpu.memory_space<vmem>>, vector<1x32x33xf32>
    %48 = vector.shape_cast %47 : vector<1x32x33xf32> to vector<32x33xf32>
    %cst_26 = arith.constant dense<0.000000e+00> : vector<8x33xf32>
    %49 = tpu.matmul %46, %48, %cst_26 {dimension_numbers = #tpu.dot_dimension_numbers<[1], [0], [0], [1], [0, 0, 1, 1], [], []>, precision = #tpu.contract_precision<fp32>} : vector<8x32xf32>, vector<32x33xf32>, vector<8x33xf32> -> vector<8x33xf32>
    %50 = arith.addf %36, %49 : vector<8x33xf32>
    %51 = vector.extract_strided_slice %50 {offsets = [0, 32], sizes = [8, 1], strides = [1, 1]} : vector<8x33xf32> to vector<8x1xf32>
    %52 = arith.negf %51 : vector<8x1xf32>
    %53 = math.exp %52 : vector<8x1xf32>
    %cst_27 = arith.constant 1.000000e+00 : f32
    %54 = vector.broadcast %cst_27 : f32 to vector<8x1xf32>
    %55 = arith.addf %54, %53 : vector<8x1xf32>
    %56 = arith.divf %54, %55 : vector<8x1xf32>
    %57 = vector.extract_strided_slice %50 {offsets = [0, 0], sizes = [8, 32], strides = [1, 1]} : vector<8x33xf32> to vector<8x32xf32>
    %58 = vector.broadcast %56 : vector<8x1xf32> to vector<8x32xf32>
    %59 = arith.mulf %58, %57 : vector<8x32xf32>
    %cst_28 = arith.constant dense<0.000000e+00> : vector<8x32xf32>
    %60 = tpu.matmul %32, %59, %cst_28 {dimension_numbers = #tpu.dot_dimension_numbers<[1], [0], [0], [1], [0, 0, 1, 1], [], []>, precision = #tpu.contract_precision<fp32>} : vector<8x8xf32>, vector<8x32xf32>, vector<8x32xf32> -> vector<8x32xf32>
    %61 = arith.subf %43, %60 : vector<8x32xf32>
    %62 = math.cos %61 : vector<8x32xf32>
    %cst_29 = arith.constant 1.000000e+00 : f32
    %63 = vector.broadcast %cst_29 : f32 to vector<8x32xf32>
    %64 = arith.mulf %63, %62 : vector<8x32xf32>
    %c1_30 = arith.constant 1 : index
    %c0_31 = arith.constant 0 : index
    %c0_32 = arith.constant 0 : index
    %65 = vector.load %arg3[%c1_30, %c0_31, %c0_32] : memref<3x32x33xf32, #tpu.memory_space<vmem>>, vector<1x32x33xf32>
    %66 = vector.shape_cast %65 : vector<1x32x33xf32> to vector<32x33xf32>
    %cst_33 = arith.constant dense<0.000000e+00> : vector<8x33xf32>
    %67 = tpu.matmul %64, %66, %cst_33 {dimension_numbers = #tpu.dot_dimension_numbers<[1], [0], [0], [1], [0, 0, 1, 1], [], []>, precision = #tpu.contract_precision<fp32>} : vector<8x32xf32>, vector<32x33xf32>, vector<8x33xf32> -> vector<8x33xf32>
    %68 = arith.addf %39, %67 : vector<8x33xf32>
    %69 = vector.extract_strided_slice %68 {offsets = [0, 32], sizes = [8, 1], strides = [1, 1]} : vector<8x33xf32> to vector<8x1xf32>
    %70 = arith.negf %69 : vector<8x1xf32>
    %71 = math.exp %70 : vector<8x1xf32>
    %cst_34 = arith.constant 1.000000e+00 : f32
    %72 = vector.broadcast %cst_34 : f32 to vector<8x1xf32>
    %73 = arith.addf %72, %71 : vector<8x1xf32>
    %74 = arith.divf %72, %73 : vector<8x1xf32>
    %75 = vector.extract_strided_slice %68 {offsets = [0, 0], sizes = [8, 32], strides = [1, 1]} : vector<8x33xf32> to vector<8x32xf32>
    %76 = vector.broadcast %74 : vector<8x1xf32> to vector<8x32xf32>
    %77 = arith.mulf %76, %75 : vector<8x32xf32>
    %cst_35 = arith.constant dense<0.000000e+00> : vector<8x32xf32>
    %78 = tpu.matmul %32, %77, %cst_35 {dimension_numbers = #tpu.dot_dimension_numbers<[1], [0], [0], [1], [0, 0, 1, 1], [], []>, precision = #tpu.contract_precision<fp32>} : vector<8x8xf32>, vector<8x32xf32>, vector<8x32xf32> -> vector<8x32xf32>
    %79 = arith.subf %61, %78 : vector<8x32xf32>
    %80 = math.cos %79 : vector<8x32xf32>
    %cst_36 = arith.constant 1.000000e+00 : f32
    %81 = vector.broadcast %cst_36 : f32 to vector<8x32xf32>
    %82 = arith.mulf %81, %80 : vector<8x32xf32>
    %c2_37 = arith.constant 2 : index
    %c0_38 = arith.constant 0 : index
    %c0_39 = arith.constant 0 : index
    %83 = vector.load %arg3[%c2_37, %c0_38, %c0_39] : memref<3x32x33xf32, #tpu.memory_space<vmem>>, vector<1x32x33xf32>
    %84 = vector.shape_cast %83 : vector<1x32x33xf32> to vector<32x33xf32>
    %cst_40 = arith.constant dense<0.000000e+00> : vector<8x33xf32>
    %85 = tpu.matmul %82, %84, %cst_40 {dimension_numbers = #tpu.dot_dimension_numbers<[1], [0], [0], [1], [0, 0, 1, 1], [], []>, precision = #tpu.contract_precision<fp32>} : vector<8x32xf32>, vector<32x33xf32>, vector<8x33xf32> -> vector<8x33xf32>
    %86 = arith.addf %42, %85 : vector<8x33xf32>
    %87 = vector.extract_strided_slice %86 {offsets = [0, 32], sizes = [8, 1], strides = [1, 1]} : vector<8x33xf32> to vector<8x1xf32>
    %88 = arith.negf %87 : vector<8x1xf32>
    %89 = math.exp %88 : vector<8x1xf32>
    %cst_41 = arith.constant 1.000000e+00 : f32
    %90 = vector.broadcast %cst_41 : f32 to vector<8x1xf32>
    %91 = arith.addf %90, %89 : vector<8x1xf32>
    %92 = arith.divf %90, %91 : vector<8x1xf32>
    %93 = vector.extract_strided_slice %86 {offsets = [0, 0], sizes = [8, 32], strides = [1, 1]} : vector<8x33xf32> to vector<8x32xf32>
    %94 = vector.broadcast %92 : vector<8x1xf32> to vector<8x32xf32>
    %95 = arith.mulf %94, %93 : vector<8x32xf32>
    %cst_42 = arith.constant dense<0.000000e+00> : vector<8x32xf32>
    %96 = tpu.matmul %32, %95, %cst_42 {dimension_numbers = #tpu.dot_dimension_numbers<[1], [0], [0], [1], [0, 0, 1, 1], [], []>, precision = #tpu.contract_precision<fp32>} : vector<8x8xf32>, vector<8x32xf32>, vector<8x32xf32> -> vector<8x32xf32>
    %97 = arith.subf %79, %96 : vector<8x32xf32>
    %98 = math.cos %97 : vector<8x32xf32>
    %cst_43 = arith.constant 1.000000e+00 : f32
    %99 = vector.broadcast %cst_43 : f32 to vector<8x32xf32>
    %100 = arith.mulf %99, %98 : vector<8x32xf32>
    %101 = tpu.concatenate %46, %64, %82, %100 in 1 : vector<8x32xf32>, vector<8x32xf32>, vector<8x32xf32>, vector<8x32xf32> -> vector<8x128xf32>
    %c0_44 = arith.constant 0 : index
    %c0_45 = arith.constant 0 : index
    %102 = vector.load %arg4[%c0_44, %c0_45] : memref<8x128xf32, #tpu.memory_space<vmem>>, vector<8x128xf32>
    tpu.vector_store %arg4[%c0_44, %c0_45], %101 {strides = array<i32>} : memref<8x128xf32, #tpu.memory_space<vmem>>, vector<8x128xf32>,
    %103 = tpu.concatenate %56, %74, %92 in 1 : vector<8x1xf32>, vector<8x1xf32>, vector<8x1xf32> -> vector<8x3xf32>
    %c0_46 = arith.constant 0 : index
    %c0_47 = arith.constant 0 : index
    %104 = vector.load %arg5[%c0_46, %c0_47] : memref<8x3xf32, #tpu.memory_space<vmem>>, vector<8x3xf32>
    tpu.vector_store %arg5[%c0_46, %c0_47], %103 {strides = array<i32>} : memref<8x3xf32, #tpu.memory_space<vmem>>, vector<8x3xf32>,
    return
  }
}

</mosaic_0001>

<bundles_post_ra>
// kernel: custom-call.1
= control target key start
LH: loop header
LB: loop body
LE: loop exit
PB: predicated region body
PF: predicated region fallthrough
CT: control target
= control target key end

     0   :  { %s59_s0 = inlined_call_operand.hbm [shape: c64[2,16,4], index: 0, kind: input, shape index: {}]   ;;  %s60_s1 = inlined_call_operand.vmem [shape: f32[2,16,4], index: 1, kind: output, shape index: {}]  }
   0x1   :  { %s2_s8 = scalar_lea.hbm %s59_s0, 128 }
   0x2   :  { %3 = vsyncpa [#allocation0], 0  ;;  %s4_s11 = sshll.u32 %s60_s1, 4  ;;  %s34_s14 = scalar_lea.hbm %s59_s0, 256  ;;  %s5_s11 = int_to_ptr.vmem [resolvable:$true] %s4_s11 }
   0x3   :  { %p11_p0 = scmp.ne.s32.totalorder %s2_s8, %s34_s14  ;;  %p13_p1 = scmp.lt.u32.totalorder %s2_s8, %s59_s0 }
   0x4   :  { %p14_p2 = scmp.lt.u32.totalorder %s34_s14, %s34_s14  ;;  %p16_p4 = scmp.lt.u32.totalorder %s34_s14, %s2_s8 }
   0x6   :  { %p15_p3 = por %p14_p2, %p13_p1 }
   0x8   :  { %p17_p5 = por %p16_p4, %p15_p3 }
   0xa   :  { %p18_p6 = pnand %p17_p5, %p11_p0 }
   0xc   :  { %21 = shalt.err (!%p18_p6)  }
   0xd   :  { %s22_s17 = scalar_lea.vmem %s5_s11, 128  ;;  %p27_p8 = scmp.lt.s32.totalorder %s5_s11, %s5_s11 }
   0xe   :  { %p23_p7 = scmp.ne.s32.totalorder %s5_s11, %s22_s17  ;;  %p28_p9 = scmp.lt.s32.totalorder %s22_s17, %s22_s17 }
  0x10   :  { %p29_p10 = por %p28_p9, %p27_p8 }
  0x12   :  { %p30_p11 = pnand %p29_p10, %p23_p7 }
  0x14   :  { %33 = shalt.err (!%p30_p11)  }
  0x15   :  { %7 = dma.hbm_to_vmem [thread:$0]  %s2_s8, 128, %s5_s11, [#allocation0] }
  0x16   :  { %35 = dma.done.wait [#allocation0], 128  }
  0x17   :  { %36 = vsyncadd [#allocation0], 4294967168 }
  0x18   :  { %9 = vsyncpa [#allocation0], 1 }

// kernel: custom-call
= control target key start
LH: loop header
LB: loop body
LE: loop exit
PB: predicated region body
PF: predicated region fallthrough
CT: control target
= control target key end

     0   :  { %2 = vsyncpa [#allocation0], 0  ;;  %s61_s0 = inlined_call_operand.hbm [shape: c64[2,16,4], index: 0, kind: input, shape index: {}]   ;;  %s62_s1 = inlined_call_operand.vmem [shape: f32[2,16,4], index: 1, kind: output, shape index: {}]  }
   0x1   :  { %s3_s8 = sshll.u32 %s62_s1, 4  ;;  %s9_s11 = scalar_lea.hbm %s61_s0, 128  ;;  %s4_s8 = int_to_ptr.vmem [resolvable:$true] %s3_s8 }
   0x2   :  { %p10_p0 = scmp.ne.s32.totalorder %s61_s0, %s9_s11  ;;  %s11_s16 = scalar_lea.hbm %s61_s0, 256 }
   0x3   :  { %p12_p1 = scmp.lt.u32.totalorder %s11_s16, %s9_s11  ;;  %p13_p2 = scmp.lt.u32.totalorder %s9_s11, %s61_s0 }
   0x5   :  { %p14_p3 = por %p13_p2, %p12_p1 }
   0x7   :  { %p15_p4 = pnand %p14_p3, %p10_p0 }
   0x9   :  { %18 = shalt.err (!%p15_p4)  }
   0xa   :  { %s19_s1 = scalar_lea.vmem %s4_s8, 128  ;;  %p24_p6 = scmp.lt.s32.totalorder %s4_s8, %s4_s8 }
   0xb   :  { %p20_p5 = scmp.ne.s32.totalorder %s4_s8, %s19_s1  ;;  %p25_p7 = scmp.lt.s32.totalorder %s19_s1, %s19_s1 }
   0xd   :  { %p26_p8 = por %p25_p7, %p24_p6 }
   0xf   :  { %p27_p9 = pnand %p26_p8, %p20_p5 }
  0x11   :  { %30 = shalt.err (!%p27_p9)  }
  0x12   :  { %6 = dma.hbm_to_vmem [thread:$0]  %s61_s0, 128, %s4_s8, [#allocation0] }
  0x13   :  { %31 = dma.done.wait [#allocation0], 128  }
  0x14   :  { %32 = vsyncadd [#allocation0], 4294967168 }
  0x15   :  { %8 = vsyncpa [#allocation0], 1 }

// kernel: custom-call.2
= control target key start
LH: loop header
LB: loop body
LE: loop exit
PB: predicated region body
PF: predicated region fallthrough
CT: control target
= control target key end

     0   :  { %s126_s0 = inlined_call_operand.vmem [shape: f32[2,4,16], index: 0, kind: input, shape index: {}]   ;;  %s127_s1 = inlined_call_operand.vmem [shape: f32[2,4,16], index: 1, kind: input, shape index: {}]   ;;  %s128_s2 = inlined_call_operand.hbm [shape: c64[2,4,16], index: 2, kind: output, shape index: {}]  }
   0x1   :  { %s87_s11 = scalar_lea.hbm %s128_s2, 128 }
   0x2   :  { %4 = vsyncpa [#allocation0], 0  ;;  %s5_s14 = sshll.u32 %s126_s0, 4  ;;  %s6_s14 = int_to_ptr.vmem [resolvable:$true] %s5_s14 }
   0x3   :  { %s18_s15 = scalar_lea.vmem %s6_s14, 128  ;;  %p23_p1 = scmp.lt.s32.totalorder %s6_s14, %s6_s14 }
   0x4   :  { %p19_p0 = scmp.ne.s32.totalorder %s6_s14, %s18_s15  ;;  %p24_p2 = scmp.lt.s32.totalorder %s18_s15, %s18_s15 }
   0x6   :  { %p25_p3 = por %p24_p2, %p23_p1 }
   0x8   :  { %p26_p4 = pnand %p25_p3, %p19_p0 }
   0xa   :  { %29 = shalt.err (!%p26_p4)  }
   0xb   :  { %p31_p5 = scmp.ne.s32.totalorder %s128_s2, %s87_s11  ;;  %s32_s0 = scalar_lea.hbm %s128_s2, 256 }
   0xc   :  { %p33_p6 = scmp.lt.u32.totalorder %s32_s0, %s87_s11  ;;  %p34_p7 = scmp.lt.u32.totalorder %s87_s11, %s128_s2 }
   0xe   :  { %p35_p8 = por %p34_p7, %p33_p6 }
  0x10   :  { %p36_p9 = pnand %p35_p8, %p31_p5 }
  0x12   :  { %39 = shalt.err (!%p36_p9)  }
  0x13   :  { %8 = dma.vmem_to_hbm [thread:$0]  %s6_s14, 128, %s128_s2, [#allocation0] }
  0x14   :  { %65 = dma.done.wait [#allocation0], 128  }
  0x15   :  { %66 = vsyncadd [#allocation0], 4294967168 }
  0x16   :  { %10 = vsyncpa [#allocation0], 1 }
  0x17   :  { %11 = vsyncpa [#allocation1], 0  ;;  %s12_s28 = sshll.u32 %s127_s1, 4  ;;  %s13_s28 = int_to_ptr.vmem [resolvable:$true] %s12_s28 }
  0x18   :  { %s40_s29 = scalar_lea.vmem %s13_s28, 128  ;;  %p45_p11 = scmp.lt.s32.totalorder %s13_s28, %s13_s28 }
  0x19   :  { %p41_p10 = scmp.ne.s32.totalorder %s13_s28, %s40_s29  ;;  %p46_p12 = scmp.lt.s32.totalorder %s40_s29, %s40_s29 }
  0x1b   :  { %p47_p13 = por %p46_p12, %p45_p11 }
  0x1d   :  { %p48_p0 = pnand %p47_p13, %p41_p10 }
  0x1f   :  { %51 = shalt.err (!%p48_p0)  }
  0x20   :  { %p53_p1 = scmp.ne.s32.totalorder %s87_s11, %s32_s0  ;;  %p56_p2 = scmp.lt.u32.totalorder %s32_s0, %s32_s0 }
  0x22   :  { %p57_p3 = por %p56_p2, %p34_p7 }
  0x24   :  { %p59_p4 = por %p57_p3, %p33_p6 }
  0x26   :  { %p60_p5 = pnand %p59_p4, %p53_p1 }
  0x28   :  { %63 = shalt.err (!%p60_p5)  }
  0x29   :  { %15 = dma.vmem_to_hbm [thread:$0]  %s13_s28, 128, %s87_s11, [#allocation1] }
  0x2a   :  { %67 = dma.done.wait [#allocation1], 128  }
  0x2b   :  { %68 = vsyncadd [#allocation1], 4294967168 }
  0x2c   :  { %17 = vsyncpa [#allocation1], 1 }

// kernel: srel_intra_rep_rho_tester.1
= control target key start
LH: loop header
LB: loop body
LE: loop exit
PB: predicated region body
PF: predicated region fallthrough
CT: control target
= control target key end

     0   :  { %v6291_v0 = vmov 0.0|0.0   ;;  %vm6292_vm0 = vmmov 0   ;;  %v6293_v4 = vmov 0.0   ;;  %v6294_v46 = vmov 683565275   ;;  %s6302_s20 = smov 97   ;;  %s7281_s3 = inlined_call_operand.vmem [shape: f32[3,32,33], index: 3, kind: input, shape index: {}]   ;;  %s7282_s0 = inlined_call_operand.vmem [shape: f32[8,32], index: 0, kind: input, shape index: {}]   ;;  %s7283_s1 = inlined_call_operand.vmem [shape: f32[8,49], index: 1, kind: input, shape index: {}]   ;;  %s7284_s2 = inlined_call_operand.vmem [shape: f32[3,49,33], index: 2, kind: input, shape index: {}]   ;;  %s7285_s5 = inlined_call_operand.vmem [shape: f32[8,3], index: 5, kind: output, shape index: {1}]   ;;  %s7286_s4 = inlined_call_operand.vmem [shape: f32[8,128], index: 4, kind: output, shape index: {0}]  }
   0x1   :  { %5868 = vmatprep.subr.bf16.mxu0 %v6291_v0  ;;  %v169_v1 = vld [vmem:[%s7281_s3] sm:$0xff]  ;;  %v170_v2 = vld [vmem:[%s7281_s3 + $0x8] sm:$0xff]  ;;  %v171_v3 = vld [vmem:[%s7281_s3 + $0x10] sm:$0xff]  ;;  %5282 = vmatprep.mubr.msk.f32.mxu0 %vm6292_vm0, %v6293_v4  ;;  %v6295_v48 = vmov 2475754826   ;;  %vm173_vm14 = vcmask 261120  }
   0x2   :  { %v178_v5 = vand.u32 4294901760, %v169_v1  ;;  %v181_v6 = vand.u32 4294901760, %v170_v2  ;;  %v172_v7 = vld [vmem:[%s7281_s3 + $0x18] sm:$0xff]  ;;  %v184_v8 = vand.u32 4294901760, %v171_v3  ;;  %v6354_v9 = vld [vmem:[%s7282_s0] sm:$0xff]  ;;  %5447 = vmatprep.subr.mxu1 %v6293_v4  ;;  %5449 = vmatprep.mubr.msk.f32.mxu1 %vm6292_vm0, %v6293_v4  ;;  %vm662_vm15 = vcmask 400384  }
   0x3   :  { %v187_v10 = vand.u32 4294901760, %v172_v7  ;;  %v66_v11 = vand.u32 2147483647, %v6354_v9  ;;  %v69_v12 = vand.u32 2139095040, %v6354_v9  ;;  %v6296_v50 = vmov 2131351028  }
   0x4   :  { %v6361_v13 = vpack.c.bf16 %v181_v6, %v178_v5  ;;  %v6363_v14 = vsub.f32 %v169_v1, %v178_v5  ;;  %v6365_v15 = vsub.f32 %v170_v2, %v181_v6  ;;  %v6367_v16 = vsub.f32 %v171_v3, %v184_v8  ;;  %s6304_s8 = smov 32   ;;  %s6305_s9 = smov 96  }
   0x5   :  { %v6369_v17 = vsub.f32 %v172_v7, %v187_v10  ;;  %v70_v18 = vshrl.u32 %v69_v12, 23  ;;  %v6372_v19 = vpack.c.bf16 %v187_v10, %v184_v8  ;;  %v73_v21 = vand.u32 8388607, %v66_v11 }
   0x6   :  { %5870 = vmatpush3.bf16.msra.mxu0 %v6361_v13  ;;  %v259_v22 = vand.u32 4294901760, %v6363_v14  ;;  %v266_v23 = vand.u32 4294901760, %v6365_v15  ;;  %v273_v24 = vand.u32 4294901760, %v6367_v16  ;;  %v5881_v28 = vpack.c.bf16 %v6365_v15, %v6363_v14 }
   0x7   :  { %5871 = vmatprep.subr.bf16.mxu0 %v6291_v0  ;;  %v4977_v20 = vadd.s32 4294967169, %v70_v18  ;;  %v280_v25 = vand.u32 4294901760, %v6369_v17  ;;  %v5884_v29 = vpack.c.bf16 %v6369_v17, %v6367_v16  ;;  %v74_v41 = vor.u32 8388608, %v73_v21 }
   0x8   :  { %v260_v27 = vsub.f32 %v6363_v14, %v259_v22  ;;  %v267_v30 = vsub.f32 %v6365_v15, %v266_v23  ;;  %v274_v31 = vsub.f32 %v6367_v16, %v273_v24  ;;  %v6391_v34 = vpack.c.bf16 %v266_v23, %v259_v22  ;;  %v41_v14 = vld [vmem:[%s7283_s1] sm:$0xff]  ;;  %v43_v16 = vld [vmem:[%s7284_s2 + $0x8] sm:$0xff] }
   0x9   :  { %v76_v26 = vadd.s32 1, %v4977_v20  ;;  %v281_v32 = vsub.f32 %v6369_v17, %v280_v25  ;;  %v6393_v35 = vpack.c.bf16 %v280_v25, %v273_v24  ;;  %v6297_v52 = vmov 2102212464   ;;  %v42_v15 = vld [vmem:[%s7284_s2] sm:$0xff] }
   0xa   :  { %5873 = vmatpush3.bf16.msra.mxu0 %v6372_v19  ;;  %v261_v33 = vand.u32 4294901760, %v260_v27  ;;  %v268_v37 = vand.u32 4294901760, %v267_v30  ;;  %v275_v38 = vand.u32 4294901760, %v274_v31  ;;  %v6298_v54 = vmov 920167782  }
   0xb   :  { %5874 = vmatprep.subr.bf16.mxu0 %v6291_v0  ;;  %vm77_vm1 = vcmp.gt.s32.totalorder %v76_v26, 0  ;;  %v282_v39 = vand.u32 4294901760, %v281_v32  ;;  %v6299_v61 = vmov 1326507024   ;;  %v114_v63 = vshll.u32 %v74_v41, 8 }
   0xc   :  { %v78_v36 = vsel %vm77_vm1, %v76_v26, 0  ;;  %v6395_v43 = vpack.c.bf16 %v268_v37, %v261_v33  ;;  %vm68_vm8 = vcmp.lt.s32.totalorder %v6354_v9, 0  ;;  %vm67_vm9 = vcmp.le.f32.partialorder %v66_v11, 0.7853982 }
   0xd   :  { %v80_v40 = vand.u32 31, %v78_v36  ;;  %v79_v42 = vshrl.u32 %v78_v36, 5  ;;  %v6397_v44 = vpack.c.bf16 %v282_v39, %v275_v38  ;;  %vm158_vm13 = vweird.f32 %v6354_v9 }
   0xe   :  { %v664_v17 = vsel %vm662_vm15, %v41_v14, 0  ;;  %vm666_vm1 = vcmask 1040384  }
   0xf   :  { %v81_v45 = vsub.s32 32, %v80_v40  ;;  %v83_v47 = vshll.u32 %v6294_v46, %v80_v40  ;;  %v86_v49 = vshll.u32 %v6295_v48, %v80_v40  ;;  %v89_v51 = vshll.u32 %v6296_v50, %v80_v40 }
  0x10   :  { %v92_v53 = vshll.u32 %v6297_v52, %v80_v40  ;;  %v95_v55 = vshll.u32 %v6298_v54, %v80_v40  ;;  %vm98_vm2 = vcmp.lt.s32.totalorder %v79_v42, 1  ;;  %vm101_vm3 = vcmp.lt.s32.totalorder %v79_v42, 4 }
  0x11   :  { %v82_v56 = vshrl.u32 %v6294_v46, %v81_v45  ;;  %v84_v57 = vshrl.u32 %v6295_v48, %v81_v45  ;;  %v87_v58 = vshrl.u32 %v6296_v50, %v81_v45  ;;  %v90_v59 = vshrl.u32 %v6297_v52, %v81_v45 }
  0x12   :  { %v93_v60 = vshrl.u32 %v6298_v54, %v81_v45  ;;  %v96_v62 = vshrl.u32 %v6299_v61, %v81_v45  ;;  %vm99_vm4 = vcmp.lt.s32.totalorder %v79_v42, 2  ;;  %vm100_vm5 = vcmp.lt.s32.totalorder %v79_v42, 3 }
  0x13   :  { %v85_v1 = vor.u32 %v84_v57, %v83_v47  ;;  %v88_v2 = vor.u32 %v87_v58, %v86_v49  ;;  %v91_v3 = vor.u32 %v90_v59, %v89_v51 }
  0x14   :  { %v94_v5 = vor.u32 %v93_v60, %v92_v53  ;;  %v97_v6 = vor.u32 %v96_v62, %v95_v55 }
  0x15   :  { %v102_v7 = vsel %vm98_vm2, %v82_v56, %v85_v1  ;;  %v103_v8 = vsel %vm101_vm3, %v91_v3, 2102212464  ;;  %v106_v10 = vsel %vm98_vm2, %v85_v1, %v88_v2  ;;  %v110_v12 = vsel %vm98_vm2, %v88_v2, %v91_v3 }
  0x16   :  { %v104_v18 = vsel %vm100_vm5, %v88_v2, %v103_v8  ;;  %v107_v20 = vsel %vm101_vm3, %v94_v5, 920167782  ;;  %v111_v21 = vsel %vm101_vm3, %v97_v6, 1326507024 }
  0x17   :  { %v108_v22 = vsel %vm100_vm5, %v91_v3, %v107_v20  ;;  %v112_v23 = vsel %vm100_vm5, %v94_v5, %v111_v21  ;;  %v105_v24 = vsel %vm99_vm4, %v102_v7, %v104_v18 }
  0x18   :  { %v109_v25 = vsel %vm99_vm4, %v106_v10, %v108_v22  ;;  %v113_v26 = vsel %vm99_vm4, %v110_v12, %v112_v23  ;;  %v121_v33 = vmul.u32 %v114_v63, %v105_v24 }
  0x19   :  { %v6410_v27 = vmul.u32.u64.low %v114_v63, %v113_v26  ;;  %v6411_v30 = vmul.u32.u64.high %v114_v63, %v113_v26, %v6410_v27  ;;  %v6413_v31 = vmul.u32.u64.low %v114_v63, %v109_v25  ;;  %v6414_v32 = vmul.u32.u64.high %v114_v63, %v109_v25, %v6413_v31 }
  0x1b   :  { %vm123_vm6 = vc.u32 %v6411_v30, %v6413_v31  ;;  %v124_v36 = vadd.s32 1, %v6414_v32  ;;  %v122_v53 = vadd.s32 %v6413_v31, %v6411_v30 }
  0x1d   :  { %v125_v37 = vsel %vm123_vm6, %v124_v36, %v6414_v32 }
  0x1e   :  { %v126_v38 = vadd.s32 %v125_v37, %v121_v33 }
  0x20   :  { %v127_v39 = vadd.s32 536870912, %v126_v38 }
  0x22   :  { %v128_v40 = vshrl.u32 %v127_v39, 30 }
  0x24   :  { %v129_v41 = vshll.u32 %v128_v40, 30  ;;  %v152_v7 = vsub.s32 4, %v128_v40 }
  0x26   :  { %v130_v42 = vsub.s32 %v126_v38, %v129_v41  ;;  %v153_v12 = vsel %vm68_vm8, %v152_v7, %v128_v40  ;;  %v46_v41 = vld [vmem:[%s7284_s2 + $0x20] sm:$0xff] }
  0x27   :  { %v155_v18 = vsel %vm67_vm9, 0, %v153_v12 }
  0x28   :  { %v132_v45 = vsub.s32 0, %v130_v42  ;;  %v159_v20 = vand.u32 3, %v155_v18 }
  0x2a   :  { %v4978_v47 = vmin.u32 %v132_v45, %v130_v42  ;;  %vm164_vm10 = vcmp.eq.s32.totalorder %v159_v20, 2  ;;  %vm161_vm11 = vcmp.eq.s32.totalorder %v159_v20, 0  ;;  %vm160_vm12 = vcmp.lt.s32.totalorder %v159_v20, 2 }
  0x2c   :  { %v134_v49 = vclz %v4978_v47 }
  0x2e   :  { %v4979_v51 = vadd.s32 4294967294, %v134_v49 }
  0x30   :  { %vm4980_vm7 = vcmp.lt.s32.totalorder %v4979_v51, 0 }
  0x31   :  { %v137_v55 = vsel %vm4980_vm7, 0, %v4979_v51 }
  0x32   :  { %v138_v56 = vsub.s32 32, %v137_v55  ;;  %v139_v57 = vshll.u32 %v130_v42, %v137_v55  ;;  %v142_v58 = vsub.s32 4294967266, %v137_v55  ;;  %v47_v42 = vld [vmem:[%s7284_s2 + $0x28] sm:$0xff] }
  0x34   :  { %v140_v59 = vshrl.u32 %v122_v53, %v138_v56  ;;  %v143_v60 = vadd.s32 127, %v142_v58  ;;  %v683_v53 = vand.u32 4294901760, %v46_v41  ;;  %v686_v56 = vand.u32 4294901760, %v47_v42  ;;  %v48_v58 = vld [vmem:[%s7284_s2 + $0x30] sm:$0x1] }
  0x36   :  { %v141_v62 = vor.u32 %v140_v59, %v139_v57  ;;  %v144_v63 = vshll.u32 %v143_v60, 23  ;;  %v6507_v57 = vsub.f32 %v46_v41, %v683_v53 }
  0x38   :  { %v145_v1 = vor.u32 4788187, %v144_v63  ;;  %v148_v2 = vcvt.s32.f32 %v141_v62  ;;  %v6518_v62 = vsub.f32 %v47_v42, %v686_v56 }
  0x3a   :  { %v146_v3 = vand.u32 2147483647, %v145_v1  ;;  %v790_v20 = vand.u32 4294901760, %v6518_v62 }
  0x3c   :  { %v149_v5 = vmul.f32 %v148_v2, %v146_v3  ;;  %v6526_v3 = vpack.c.bf16 %v686_v56, %v683_v53 }
  0x3e   :  { %v150_v6 = vxor.u32 2147483648, %v149_v5 }
  0x40   :  { %v151_v8 = vsel %vm68_vm8, %v150_v6, %v149_v5  ;;  %v668_v5 = vsel %vm666_vm1, %v48_v58, 0 }
  0x41   :  { %v154_v10 = vsel %vm67_vm9, %v6354_v9, %v151_v8  ;;  %v783_v8 = vand.u32 4294901760, %v6507_v57 }
  0x42   :  { %6263 = vcosq.f32 %v154_v10 }
  0x43   :  { %6265 = vsinq.f32 %v154_v10 }
  0x4c   :  { %v6264_v21 = vpop.eup %6263 }
  0x4d   :  { %v6266_v22 = vpop.eup %6265  ;;  %v165_v23 = vxor.u32 2147483648, %v6264_v21 }
  0x4e   :  { %v162_v24 = vxor.u32 2147483648, %v6266_v22 }
  0x4f   :  { %v166_v11 = vsel %vm164_vm10, %v165_v23, %v6266_v22  ;;  %vm1206_vm10 = vcmask 64512  }
  0x50   :  { %v163_v25 = vsel %vm161_vm11, %v6264_v21, %v162_v24  ;;  %v6540_v21 = vand.u32 4294901760, %v668_v5  ;;  %v784_v24 = vsub.f32 %v6507_v57, %v783_v8 }
  0x51   :  { %v167_v26 = vsel %vm160_vm12, %v163_v25, %v166_v11 }
  0x52   :  { %v6425_v27 = vsel %vm158_vm13, nan, %v167_v26  ;;  %v796_v22 = vsub.f32 %v668_v5, %v6540_v21 }
  0x53   :  { %v175_v30 = vsel %vm173_vm14, %v6425_v27, 0 }
  0x54   :  { %v246_v31 = vand.u32 4294901760, %v175_v30 }
  0x56   :  { %v247_v32 = vsub.f32 %v175_v30, %v246_v31  ;;  %v791_v30 = vsub.f32 %v6518_v62, %v790_v20 }
  0x58   :  { %v248_v33 = vand.u32 4294901760, %v247_v32 }
  0x5a   :  { %v249_v36 = vsub.f32 %v247_v32, %v248_v33 }
  0x5c   :  { %v250_v37 = vand.u32 4294901760, %v249_v36  ;;  %v797_v36 = vand.u32 4294901760, %v796_v22 }
  0x5e   :  { %5283 = vmatmul.mubr.f32.vlgmr.msra.gmra.mrb[0].mxu0 %v250_v37  ;;  %v798_v14 = vsub.f32 %v796_v22, %v797_v36 }
  0x5f   :  { %5876 = vmatpush3.bf16.msra.mxu0 %v6395_v43  ;;  %5293 = vmatprep.mubr.msk.f32.mxu0 %vm6292_vm0, %v6293_v4  ;;  %v45_v43 = vld [vmem:[%s7284_s2 + $0x18] sm:$0xff] }
  0x60   :  { %5877 = vmatprep.subr.bf16.mxu0 %v6291_v0  ;;  %v680_v40 = vand.u32 4294901760, %v45_v43 }
  0x62   :  { %v6498_v49 = vsub.f32 %v45_v43, %v680_v40  ;;  %v6300_v43 = vmov 32  }
  0x63   :  { %5879 = vmatpush3.bf16.msra.mxu0 %v6397_v44  ;;  %v6478_v44 = vand.u32 4294901760, %v664_v17  ;;  %6261 = vset.pattern.permute.xlu0 %v6300_v43 }
  0x64   :  { %5880 = vmatprep.subr.bf16.mxu0 %v6291_v0  ;;  %v776_v2 = vand.u32 4294901760, %v6498_v49  ;;  %6262 = vset.pattern.permute.xlu1 %v6300_v43 }
  0x65   :  { %v6493_v45 = vsub.f32 %v664_v17, %v6478_v44 }
  0x66   :  { %5294 = vmatmul.mubr.f32.vlgmr.msra.gmra.mrb[0].mxu0 %v246_v31  ;;  %v777_v18 = vsub.f32 %v6498_v49, %v776_v2 }
  0x67   :  { %5882 = vmatpush3.bf16.msra.mxu0 %v5881_v28  ;;  %5304 = vmatprep.mubr.msk.f32.mxu0 %vm6292_vm0, %v6293_v4  ;;  %v671_v28 = vand.u32 4294901760, %v42_v15  ;;  %v6513_v59 = vand.u32 4294901760, %v6493_v45 }
  0x68   :  { %5883 = vmatprep.subr.bf16.mxu0 %v6291_v0  ;;  %v778_v26 = vand.u32 4294901760, %v777_v18  ;;  %v4988_v18 = vld [vmem:[%s7281_s3 + $0x30] sm:$0xff] }
  0x69   :  { %v745_v6 = vsub.f32 %v6493_v45, %v6513_v59 }
  0x6b   :  { %5885 = vmatpush3.bf16.msra.mxu0 %v5884_v29  ;;  %v674_v29 = vand.u32 4294901760, %v43_v16  ;;  %v6545_v23 = vand.u32 4294901760, %v745_v6 }
  0x6c   :  { %5886 = vmatprep.subr.bf16.mxu0 %v6291_v0 }
  0x6d   :  { %v6480_v38 = vsub.f32 %v43_v16, %v674_v29 }
  0x6e   :  { %5305 = vmatmul.mubr.f32.vlgmr.msra.gmra.mrb[0].mxu0 %v247_v32  ;;  %v785_v32 = vand.u32 4294901760, %v784_v24  ;;  %v1775_v24 = vand.u32 4294901760, %v4988_v18 }
  0x6f   :  { %5888 = vmatpush3.bf16.msra.mxu0 %v6361_v13  ;;  %5315 = vmatprep.mubr.msk.f32.mxu0 %vm6292_vm0, %v6293_v4  ;;  %v762_v51 = vand.u32 4294901760, %v6480_v38 }
  0x70   :  { %5889 = vmatprep.subr.bf16.mxu0 %v6291_v0 }
  0x71   :  { %v763_v63 = vsub.f32 %v6480_v38, %v762_v51 }
  0x73   :  { %5891 = vmatpush3.bf16.msra.mxu0 %v6372_v19  ;;  %v764_v10 = vand.u32 4294901760, %v763_v63 }
  0x74   :  { %5892 = vmatprep.subr.bf16.mxu0 %v6291_v0 }
  0x76   :  { %5316 = vmatmul.mubr.f32.vlgmr.msra.gmra.mrb[0].mxu0 %v248_v33  ;;  %v792_v33 = vand.u32 4294901760, %v791_v30  ;;  %v6672_v30 = vsub.f32 %v4988_v18, %v1775_v24 }
  0x77   :  { %5894 = vmatpush3.bf16.msra.mxu0 %v6391_v34  ;;  %5326 = vmatprep.mubr.msk.f32.mxu0 %vm6292_vm0, %v6293_v4  ;;  %v6470_v34 = vsub.f32 %v42_v15, %v671_v28  ;;  %v799_v15 = vand.u32 4294901760, %v798_v14 }
  0x78   :  { %5895 = vmatprep.subr.bf16.mxu0 %v6291_v0  ;;  %v5920_v37 = vpack.c.bf16 %v792_v33, %v785_v32 }
  0x79   :  { %v755_v47 = vand.u32 4294901760, %v6470_v34  ;;  %v5923_v16 = vpack.c.bf16 %v6480_v38, %v6470_v34 }
  0x7b   :  { %5897 = vmatpush3.bf16.msra.mxu0 %v6393_v35  ;;  %v44_v35 = vld [vmem:[%s7284_s2 + $0x10] sm:$0xff]  ;;  %v756_v60 = vsub.f32 %v6470_v34, %v755_v47  ;;  %v5947_v34 = vpack.c.bf16 %v790_v20, %v783_v8 }
  0x7c   :  { %5898 = vmatprep.subr.bf16.mxu0 %v6291_v0  ;;  %v677_v39 = vand.u32 4294901760, %v44_v35 }
  0x7d   :  { %v757_v7 = vand.u32 4294901760, %v756_v60 }
  0x7e   :  { %5327 = vmatmul.mubr.f32.vlgmr.msra.gmra.mrb[0].mxu0 %v246_v31  ;;  %v6502_v55 = vpack.c.bf16 %v680_v40, %v677_v39 }
  0x7f   :  { %5900 = vmatpush3.bf16.msra.mxu0 %v6361_v13  ;;  %5337 = vmatprep.mubr.msk.f32.mxu0 %vm6292_vm0, %v6293_v4  ;;  %v6483_v13 = vpack.c.bf16 %v674_v29, %v671_v28  ;;  %v5914_v11 = vpack.c.bf16 %v764_v10, %v757_v7  ;;  %v5929_v28 = vpack.c.bf16 %v6518_v62, %v6507_v57  ;;  %v4986_v10 = vld [vmem:[%s7281_s3 + $0x20] sm:$0xff] }
  0x80   :  { %5901 = vmatprep.subr.bf16.mxu0 %v6291_v0  ;;  %v5941_v29 = vpack.c.bf16 %v762_v51, %v755_v47  ;;  %v19_v47 = vlaneseq  ;;  %v1769_v20 = vand.u32 4294901760, %v4986_v10 }
  0x83   :  { %5903 = vmatpush3.bf16.msra.mxu0 %v6372_v19  ;;  %v6496_v19 = vsub.f32 %v44_v35, %v677_v39 }
  0x84   :  { %5904 = vmatprep.subr.bf16.mxu0 %v6291_v0 }
  0x85   :  { %v769_v1 = vand.u32 4294901760, %v6496_v19  ;;  %v5926_v17 = vpack.c.bf16 %v6498_v49, %v6496_v19  ;;  %v20_v49 = vshrl.u32 %v19_v47, 7 }
  0x86   :  { %5338 = vmatmul.mubr.f32.vlgmr.msra.gmra.mrb[0].mxu0 %v246_v31 }
  0x87   :  { %5906 = vmatpush3.bf16.msra.mxu0 %v6483_v13  ;;  %5354 = vmatprep.mubr.msk.f32.mxu0 %vm6292_vm0, %v6293_v4  ;;  %v770_v12 = vsub.f32 %v6496_v19, %v769_v1  ;;  %v5944_v35 = vpack.c.bf16 %v776_v2, %v769_v1  ;;  %v22_v19 = vand.u32 127, %v19_v47  ;;  %vm24_vm4 = vcmp.lt.s32.totalorder %v20_v49, 4 }
  0x88   :  { %5907 = vmatprep.subr.bf16.mxu0 %v6291_v0  ;;  %vm32_vm6 = vcmp.ge.s32.totalorder %v20_v49, 4 }
  0x89   :  { %v771_v25 = vand.u32 4294901760, %v770_v12  ;;  %vm35_vm2 = vcmp.ge.s32.totalorder %v22_v19, 4  ;;  %vm36_vm3 = vcmp.lt.s32.totalorder %v22_v19, 8  ;;  %vm27_vm5 = vcmp.lt.s32.totalorder %v22_v19, 4  ;;  %v4987_v12 = vld [vmem:[%s7281_s3 + $0x28] sm:$0xff] }
  0x8a   :  { %vm37_vm7 = vmand %vm35_vm2, %vm36_vm3 }
  0x8b   :  { %5909 = vmatpush3.bf16.msra.mxu0 %v6502_v55  ;;  %v5917_v31 = vpack.c.bf16 %v778_v26, %v771_v25  ;;  %vm29_vm8 = vmand %vm24_vm4, %vm27_vm5  ;;  %v6668_v25 = vsub.f32 %v4986_v10, %v1769_v20 }
  0x8c   :  { %5910 = vmatprep.subr.bf16.mxu0 %v6291_v0  ;;  %vm38_vm9 = vmand %vm32_vm6, %vm37_vm7  ;;  %v30_v51 = vsel %vm29_vm8, 1.0, %v6293_v4 }
  0x8d   :  { %v39_v53 = vsel %vm38_vm9, 1.0, %v6293_v4  ;;  %v1850_v33 = vand.u32 4294901760, %v6668_v25 }
  0x8f   :  { %5912 = vmatpush3.bf16.msra.mxu0 %v6526_v3 }
  0x90   :  { %5352 = vmatprep.subr.mxu0 %v6293_v4 }
  0x93   :  { %5353 = vmatpush3.msra.mxu0 %v6540_v21 }
  0x94   :  { %5913 = vmatprep.subr.bf16.mxu0 %v6291_v0  ;;  %5355 = vmatmul.mubr.f32.vlgmr.msra.gmra.mrb[0].mxu0 %v6545_v23 }
  0x95   :  { %5915 = vmatpush3.bf16.msra.mxu0 %v5914_v11  ;;  %5371 = vmatprep.mubr.msk.f32.mxu0 %vm6292_vm0, %v6293_v4 }
  0x96   :  { %5916 = vmatprep.subr.bf16.mxu0 %v6291_v0 }
  0x99   :  { %5918 = vmatpush3.bf16.msra.mxu0 %v5917_v31 }
  0x9a   :  { %5919 = vmatprep.subr.bf16.mxu0 %v6291_v0 }
  0x9d   :  { %5921 = vmatpush3.bf16.msra.mxu0 %v5920_v37  ;;  %v1864_v37 = vand.u32 4294901760, %v6672_v30 }
  0x9e   :  { %5369 = vmatprep.subr.mxu0 %v6293_v4 }
  0xa1   :  { %5370 = vmatpush3.msra.mxu0 %v799_v15  ;;  %v1851_v15 = vsub.f32 %v6668_v25, %v1850_v33 }
  0xa2   :  { %5922 = vmatprep.subr.bf16.mxu0 %v6291_v0  ;;  %5372 = vmatmul.mubr.f32.vlgmr.msra.gmra.mrb[0].mxu0 %v6478_v44 }
  0xa3   :  { %5924 = vmatpush3.bf16.msra.mxu0 %v5923_v16  ;;  %5388 = vmatprep.mubr.msk.f32.mxu0 %vm6292_vm0, %v6293_v4 }
  0xa4   :  { %5925 = vmatprep.subr.bf16.mxu0 %v6291_v0 }
  0xa7   :  { %5927 = vmatpush3.bf16.msra.mxu0 %v5926_v17  ;;  %v1865_v17 = vsub.f32 %v6672_v30, %v1864_v37 }
  0xa8   :  { %5928 = vmatprep.subr.bf16.mxu0 %v6291_v0 }
  0xab   :  { %5930 = vmatpush3.bf16.msra.mxu0 %v5929_v28 }
  0xac   :  { %5386 = vmatprep.subr.mxu0 %v6293_v4 }
  0xaf   :  { %5387 = vmatpush3.msra.mxu0 %v796_v22  ;;  %v4989_v22 = vld [vmem:[%s7281_s3 + $0x38] sm:$0xff] }
  0xb0   :  { %5931 = vmatprep.subr.bf16.mxu0 %v6291_v0  ;;  %5389 = vmatmul.mubr.f32.vlgmr.msra.gmra.mrb[0].mxu0 %v6493_v45  ;;  %v1778_v11 = vand.u32 4294901760, %v4989_v22 }
  0xb1   :  { %5933 = vmatpush3.bf16.msra.mxu0 %v6483_v13  ;;  %5405 = vmatprep.mubr.msk.f32.mxu0 %vm6292_vm0, %v6293_v4 }
  0xb2   :  { %5934 = vmatprep.subr.bf16.mxu0 %v6291_v0  ;;  %v6676_v32 = vsub.f32 %v4989_v22, %v1778_v11  ;;  %v6700_v47 = vpack.c.bf16 %v1778_v11, %v1775_v24 }
  0xb4   :  { %v1871_v14 = vand.u32 4294901760, %v6676_v32  ;;  %v5974_v19 = vpack.c.bf16 %v6676_v32, %v6672_v30 }
  0xb5   :  { %5936 = vmatpush3.bf16.msra.mxu0 %v6502_v55 }
  0xb6   :  { %5937 = vmatprep.subr.bf16.mxu0 %v6291_v0  ;;  %v1872_v28 = vsub.f32 %v6676_v32, %v1871_v14 }
  0xb8   :  { %v1873_v43 = vand.u32 4294901760, %v1872_v28 }
  0xb9   :  { %5939 = vmatpush3.bf16.msra.mxu0 %v6526_v3 }
  0xba   :  { %5403 = vmatprep.subr.mxu0 %v6293_v4 }
  0xbd   :  { %5404 = vmatpush3.msra.mxu0 %v6540_v21 }
  0xbe   :  { %5940 = vmatprep.subr.bf16.mxu0 %v6291_v0  ;;  %5406 = vmatmul.mubr.f32.vlgmr.msra.gmra.mrb[0].mxu0 %v6513_v59 }
  0xbf   :  { %5942 = vmatpush3.bf16.msra.mxu0 %v5941_v29  ;;  %5422 = vmatprep.mubr.msk.f32.mxu0 %vm6292_vm0, %v6293_v4  ;;  %v1852_v29 = vand.u32 4294901760, %v1851_v15 }
  0xc0   :  { %5943 = vmatprep.subr.bf16.mxu0 %v6291_v0 }
  0xc3   :  { %5945 = vmatpush3.bf16.msra.mxu0 %v5944_v35 }
  0xc4   :  { %5946 = vmatprep.subr.bf16.mxu0 %v6291_v0 }
  0xc7   :  { %5948 = vmatpush3.bf16.msra.mxu0 %v5947_v34  ;;  %v1866_v34 = vand.u32 4294901760, %v1865_v17 }
  0xc8   :  { %5420 = vmatprep.subr.mxu0 %v6293_v4 }
  0xcb   :  { %5421 = vmatpush3.msra.mxu0 %v797_v36 }
  0xcc   :  { %5949 = vmatprep.subr.bf16.mxu0 %v6291_v0  ;;  %5423 = vmatmul.mubr.f32.vlgmr.msra.gmra.mrb[0].mxu0 %v6478_v44 }
  0xcd   :  { %5951 = vmatpush3.bf16.msra.mxu0 %v6483_v13  ;;  %5439 = vmatprep.mubr.msk.f32.mxu0 %vm6292_vm0, %v6293_v4 }
  0xce   :  { %5952 = vmatprep.subr.bf16.mxu0 %v6291_v0 }
  0xd1   :  { %5954 = vmatpush3.bf16.msra.mxu0 %v6502_v55  ;;  %v40_v55 = vadd.f32 %v39_v53, %v30_v51 }
  0xd2   :  { %5955 = vmatprep.subr.bf16.mxu0 %v6291_v0 }
  0xd3   :  { %v1208_v56 = vsel %vm1206_vm10, %v40_v55, 0 }
  0xd4   :  { %v6620_v57 = vand.u32 4294901760, %v1208_v56 }
  0xd5   :  { %5957 = vmatpush3.bf16.msra.mxu0 %v6526_v3 }
  0xd6   :  { %5437 = vmatprep.subr.mxu0 %v6293_v4  ;;  %v6623_v58 = vsub.f32 %v1208_v56, %v6620_v57 }
  0xd8   :  { %v6626_v60 = vand.u32 4294901760, %v6623_v58 }
  0xd9   :  { %5438 = vmatpush3.msra.mxu0 %v6540_v21  ;;  %v1772_v21 = vand.u32 4294901760, %v4987_v12 }
  0xda   :  { %5440 = vmatmul.mubr.f32.vlgmr.msra.gmra.mrb[0].mxu0 %v6478_v44  ;;  %5442 = vmatprep.subr.mxu0 %v6293_v4  ;;  %v1279_v62 = vsub.f32 %v6623_v58, %v6626_v60 }
  0xdb   :  { %5444 = vmatprep.mubr.msk.f32.mxu0 %vm6292_vm0, %v6293_v4  ;;  %v6670_v26 = vsub.f32 %v4987_v12, %v1772_v21  ;;  %v6674_v31 = vpack.c.bf16 %v1772_v21, %v1769_v20 }
  0xdc   :  { %v6630_v2 = vand.u32 4294901760, %v1279_v62 }
  0xdd   :  { %v1857_v36 = vand.u32 4294901760, %v6670_v26 }
  0xdf   :  { %v1858_v16 = vsub.f32 %v6670_v26, %v1857_v36 }
  0xe1   :  { %v1859_v35 = vand.u32 4294901760, %v1858_v16 }
 0x1ad   :  { %v1190_v38 = vpop.f32.mrb[0].mxu0 }
 0x1ae   :  { %v4981_v13 = vmul.f32 -1.442695, %v1190_v38  ;;  %v5441_v39 = vpop.f32.mrb[1].mxu0 }
 0x1b0   :  { %6267 = vpow2.f32 %v4981_v13  ;;  %v5968_v13 = vpack.c.bf16 %v1873_v43, %v1866_v34 }
 0x1ba   :  { %v6268_v40 = vpop.eup %6267 }
 0x1bb   :  { %v1197_v41 = vadd.f32 1.0, %v6268_v40 }
 0x1bd   :  { %6269 = vrcp.f32 %v1197_v41  ;;  %v5971_v41 = vpack.c.bf16 %v6670_v26, %v6668_v25 }
 0x1c7   :  { %v6615_v42 = vpop.eup %6269 }
 0x1c8   :  { %1202 = vperm.xlu0 %6261, %v6615_v42  }
 0x247   :  { %v1203_v63 = vpop.permute.xlu0 %1202 }
 0x248   :  { %v1205_v1 = vmul.f32 %v1203_v63, %v1190_v38  ;;  %v5965_v38 = vpack.c.bf16 %v1859_v35, %v1852_v29 }
 0x24a   :  { %v1211_v3 = vand.u32 4294901760, %v1205_v1 }
 0x24c   :  { %v1288_v5 = vsub.f32 %v1205_v1, %v1211_v3  ;;  %5443 = vmatpush3.msra.mxu0 %v1211_v3 }
 0x24d   :  { %5445 = vmatmul.mubr.f32.vlgmr.msra.gmra.mrb[2].mxu0 %v6630_v2  ;;  %5958 = vmatprep.subr.bf16.mxu0 %v6291_v0 }
 0x24e   :  { %v1289_v6 = vand.u32 4294901760, %v1288_v5  ;;  %5480 = vmatprep.mubr.msk.f32.mxu0 %vm6292_vm0, %v6293_v4  ;;  %5960 = vmatpush3.bf16.msra.mxu0 %v6674_v31 }
 0x24f   :  { %5961 = vmatprep.subr.bf16.mxu0 %v6291_v0 }
 0x250   :  { %v1290_v7 = vsub.f32 %v1288_v5, %v1289_v6 }
 0x252   :  { %v1291_v8 = vand.u32 4294901760, %v1290_v7  ;;  %5963 = vmatpush3.bf16.msra.mxu0 %v6700_v47 }
 0x253   :  { %5994 = vmatprep.subr.bf16.mxu0 %v6291_v0 }
 0x254   :  { %5448 = vmatpush3.msra.mxu1 %v1291_v8 }
 0x255   :  { %5450 = vmatmul.mubr.f32.vlgmr.msra.gmra.mrb[0].mxu1 %v6620_v57  ;;  %5452 = vmatprep.subr.mxu1 %v6293_v4 }
 0x256   :  { %5453 = vmatpush3.msra.mxu1 %v1288_v5  ;;  %5454 = vmatprep.mubr.msk.f32.mxu1 %vm6292_vm0, %v6293_v4 }
 0x257   :  { %5457 = vmatprep.subr.mxu1 %v6293_v4 }
 0x25d   :  { %5455 = vmatmul.mubr.f32.vlgmr.msra.gmra.mrb[0].mxu1 %v6623_v58 }
 0x25e   :  { %5458 = vmatpush3.msra.mxu1 %v1211_v3  ;;  %5459 = vmatprep.mubr.msk.f32.mxu1 %vm6292_vm0, %v6293_v4 }
 0x25f   :  { %5462 = vmatprep.subr.mxu1 %v6293_v4 }
 0x265   :  { %5460 = vmatmul.mubr.f32.vlgmr.msra.gmra.mrb[0].mxu1 %v6626_v60 }
 0x266   :  { %5463 = vmatpush3.msra.mxu1 %v1289_v6  ;;  %5464 = vmatprep.mubr.msk.f32.mxu1 %vm6292_vm0, %v6293_v4 }
 0x267   :  { %5467 = vmatprep.subr.mxu1 %v6293_v4 }
 0x26d   :  { %5465 = vmatmul.mubr.f32.vlgmr.msra.gmra.mrb[0].mxu1 %v6620_v57 }
 0x26e   :  { %5468 = vmatpush3.msra.mxu1 %v1211_v3  ;;  %5469 = vmatprep.mubr.msk.f32.mxu1 %vm6292_vm0, %v6293_v4 }
 0x26f   :  { %5964 = vmatprep.subr.bf16.mxu1 %v6291_v0 }
 0x275   :  { %5470 = vmatmul.mubr.f32.vlgmr.msra.gmra.mrb[0].mxu1 %v6620_v57 }
 0x276   :  { %5491 = vmatprep.mubr.msk.f32.mxu1 %vm6292_vm0, %v6293_v4  ;;  %5966 = vmatpush3.bf16.msra.mxu1 %v5965_v38 }
 0x277   :  { %5967 = vmatprep.subr.bf16.mxu1 %v6291_v0 }
 0x27a   :  { %5969 = vmatpush3.bf16.msra.mxu1 %v5968_v13 }
 0x27b   :  { %5970 = vmatprep.subr.bf16.mxu1 %v6291_v0 }
 0x320   :  { %v1282_v39 = vpop.f32.mrb[2].mxu0 }
 0x321   :  { %v5446_v40 = vpop.f32.mrb[3].mxu0 }
 0x348   :  { %v1652_v49 = vpop.f32.mrb[0].mxu1 }
 0x349   :  { %v6138_v51 = vadd.f32 %v1652_v49, %v1282_v39  ;;  %v5471_v53 = vpop.f32.mrb[1].mxu1 }
 0x34b   :  { %v6707_v55 = vsub.f32 %v6354_v9, %v6138_v51 }
 0x34d   :  { %v1660_v56 = vand.u32 2139095040, %v6707_v55  ;;  %v1657_v62 = vand.u32 2147483647, %v6707_v55  ;;  %vm1659_vm5 = vcmp.lt.s32.totalorder %v6707_v55, 0  ;;  %vm1749_vm10 = vweird.f32 %v6707_v55 }
 0x34f   :  { %v1661_v63 = vshrl.u32 %v1660_v56, 23  ;;  %v1664_v3 = vand.u32 8388607, %v1657_v62  ;;  %vm1658_vm6 = vcmp.le.f32.partialorder %v1657_v62, 0.7853982 }
 0x351   :  { %v4982_v1 = vadd.s32 4294967169, %v1661_v63  ;;  %v1665_v7 = vor.u32 8388608, %v1664_v3 }
 0x353   :  { %v1667_v5 = vadd.s32 1, %v4982_v1  ;;  %v1705_v20 = vshll.u32 %v1665_v7, 8 }
 0x355   :  { %vm1668_vm11 = vcmp.gt.s32.totalorder %v1667_v5, 0 }
 0x356   :  { %v1669_v6 = vsel %vm1668_vm11, %v1667_v5, 0 }
 0x357   :  { %v1671_v8 = vand.u32 31, %v1669_v6  ;;  %v1670_v10 = vshrl.u32 %v1669_v6, 5 }
 0x359   :  { %v1672_v12 = vsub.s32 32, %v1671_v8  ;;  %v1683_v18 = vshll.u32 %v6297_v52, %v1671_v8  ;;  %v1686_v9 = vshll.u32 %v6298_v54, %v1671_v8  ;;  %v1674_v24 = vshll.u32 %v6294_v46, %v1671_v8 }
 0x35a   :  { %v1677_v15 = vshll.u32 %v6295_v48, %v1671_v8  ;;  %v1680_v17 = vshll.u32 %v6296_v50, %v1671_v8  ;;  %vm1692_vm12 = vcmp.lt.s32.totalorder %v1670_v10, 4  ;;  %vm1689_vm13 = vcmp.lt.s32.totalorder %v1670_v10, 1 }
 0x35b   :  { %v1684_v21 = vshrl.u32 %v6298_v54, %v1672_v12  ;;  %v1687_v22 = vshrl.u32 %v6299_v61, %v1672_v12  ;;  %v1675_v11 = vshrl.u32 %v6295_v48, %v1672_v12  ;;  %v1678_v16 = vshrl.u32 %v6296_v50, %v1672_v12 }
 0x35c   :  { %v1681_v28 = vshrl.u32 %v6297_v52, %v1672_v12  ;;  %v1673_v43 = vshrl.u32 %v6294_v46, %v1672_v12  ;;  %vm1690_vm15 = vcmp.lt.s32.totalorder %v1670_v10, 2  ;;  %vm1691_vm2 = vcmp.lt.s32.totalorder %v1670_v10, 3 }
 0x35d   :  { %v1685_v29 = vor.u32 %v1684_v21, %v1683_v18  ;;  %v1688_v35 = vor.u32 %v1687_v22, %v1686_v9  ;;  %v1676_v34 = vor.u32 %v1675_v11, %v1674_v24  ;;  %v1679_v38 = vor.u32 %v1678_v16, %v1677_v15 }
 0x35e   :  { %v1682_v13 = vor.u32 %v1681_v28, %v1680_v17 }
 0x35f   :  { %v1698_v39 = vsel %vm1692_vm12, %v1685_v29, 920167782  ;;  %v1702_v40 = vsel %vm1692_vm12, %v1688_v35, 1326507024  ;;  %v1697_v51 = vsel %vm1689_vm13, %v1676_v34, %v1679_v38  ;;  %v1693_v63 = vsel %vm1689_vm13, %v1673_v43, %v1676_v34 }
 0x360   :  { %v1694_v49 = vsel %vm1692_vm12, %v1682_v13, 2102212464  ;;  %v1699_v53 = vsel %vm1691_vm2, %v1682_v13, %v1698_v39  ;;  %v1701_v56 = vsel %vm1689_vm13, %v1679_v38, %v1682_v13  ;;  %v1703_v5 = vsel %vm1691_vm2, %v1685_v29, %v1702_v40 }
 0x361   :  { %v1695_v1 = vsel %vm1691_vm2, %v1679_v38, %v1694_v49  ;;  %v1700_v3 = vsel %vm1690_vm15, %v1697_v51, %v1699_v53  ;;  %v1704_v6 = vsel %vm1690_vm15, %v1701_v56, %v1703_v5 }
 0x362   :  { %v6724_v7 = vmul.u32.u64.low %v1705_v20, %v1700_v3  ;;  %v6725_v8 = vmul.u32.u64.high %v1705_v20, %v1700_v3, %v6724_v7  ;;  %v6727_v12 = vmul.u32.u64.low %v1705_v20, %v1704_v6  ;;  %v6728_v18 = vmul.u32.u64.high %v1705_v20, %v1704_v6, %v6727_v12 }
 0x363   :  { %v1696_v9 = vsel %vm1690_vm15, %v1693_v63, %v1695_v1 }
 0x364   :  { %v1715_v21 = vadd.s32 1, %v6725_v8  ;;  %v1712_v22 = vmul.u32 %v1705_v20, %v1696_v9  ;;  %vm1714_vm3 = vc.u32 %v6728_v18, %v6724_v7  ;;  %v1713_v38 = vadd.s32 %v6724_v7, %v6728_v18 }
 0x366   :  { %v1716_v10 = vsel %vm1714_vm3, %v1715_v21, %v6725_v8 }
 0x367   :  { %v1717_v24 = vadd.s32 %v1716_v10, %v1712_v22 }
 0x369   :  { %v1718_v11 = vadd.s32 536870912, %v1717_v24 }
 0x36b   :  { %v1719_v15 = vshrl.u32 %v1718_v11, 30 }
 0x36d   :  { %v1720_v16 = vshll.u32 %v1719_v15, 30  ;;  %v1743_v8 = vsub.s32 4, %v1719_v15 }
 0x36f   :  { %v1721_v17 = vsub.s32 %v1717_v24, %v1720_v16  ;;  %v1744_v12 = vsel %vm1659_vm5, %v1743_v8, %v1719_v15  ;;  %v4963_v15 = vld [vmem:[%s7284_s2 + $0x38] sm:$0xff] }
 0x370   :  { %v1746_v18 = vsel %vm1658_vm6, 0, %v1744_v12 }
 0x371   :  { %v1723_v28 = vsub.s32 0, %v1721_v17  ;;  %v1750_v9 = vand.u32 3, %v1746_v18 }
 0x373   :  { %v4983_v29 = vmin.u32 %v1723_v28, %v1721_v17  ;;  %vm1755_vm7 = vcmp.eq.s32.totalorder %v1750_v9, 2  ;;  %vm1752_vm8 = vcmp.eq.s32.totalorder %v1750_v9, 0  ;;  %vm1751_vm9 = vcmp.lt.s32.totalorder %v1750_v9, 2  ;;  %v4969_v9 = vld [vmem:[%s7284_s2 + $0x68] sm:$0x1] }
 0x375   :  { %v1725_v35 = vclz %v4983_v29  ;;  %v4964_v29 = vld [vmem:[%s7284_s2 + $0x40] sm:$0xff] }
 0x377   :  { %v4984_v34 = vadd.s32 4294967294, %v1725_v35 }
 0x379   :  { %vm4985_vm4 = vcmp.lt.s32.totalorder %v4984_v34, 0 }
 0x37a   :  { %v1728_v43 = vsel %vm4985_vm4, 0, %v4984_v34 }
 0x37b   :  { %v1729_v13 = vsub.s32 32, %v1728_v43  ;;  %v1733_v39 = vsub.s32 4294967266, %v1728_v43  ;;  %v1730_v20 = vshll.u32 %v1721_v17, %v1728_v43  ;;  %v2257_v43 = vand.u32 4294901760, %v4963_v15 }
 0x37d   :  { %v1731_v40 = vshrl.u32 %v1713_v38, %v1729_v13  ;;  %v1734_v49 = vadd.s32 127, %v1733_v39  ;;  %v2260_v38 = vand.u32 4294901760, %v4964_v29  ;;  %v6759_v39 = vsub.f32 %v4963_v15, %v2257_v43 }
 0x37e   :  { %v2254_v15 = vsel %vm666_vm1, %v4969_v9, 0 }
 0x37f   :  { %v1732_v51 = vor.u32 %v1731_v40, %v1730_v20  ;;  %v1735_v53 = vshll.u32 %v1734_v49, 23  ;;  %v6761_v20 = vsub.f32 %v4964_v29, %v2260_v38  ;;  %v4965_v40 = vld [vmem:[%s7284_s2 + $0x48] sm:$0xff]  ;;  %v4966_v49 = vld [vmem:[%s7284_s2 + $0x50] sm:$0xff] }
 0x381   :  { %v1736_v56 = vor.u32 4788187, %v1735_v53  ;;  %v1739_v1 = vcvt.s32.f32 %v1732_v51  ;;  %v2263_v53 = vand.u32 4294901760, %v4965_v40 }
 0x383   :  { %v1737_v63 = vand.u32 2147483647, %v1736_v56  ;;  %v2266_v56 = vand.u32 4294901760, %v4966_v49 }
 0x385   :  { %v1740_v3 = vmul.f32 %v1739_v1, %v1737_v63  ;;  %v4967_v1 = vld [vmem:[%s7284_s2 + $0x58] sm:$0xff]  ;;  %v6785_v8 = vsub.f32 %v4966_v49, %v2266_v56 }
 0x386   :  { %v2269_v12 = vand.u32 4294901760, %v4967_v1 }
 0x387   :  { %v1741_v5 = vxor.u32 2147483648, %v1740_v3 }
 0x389   :  { %v1742_v6 = vsel %vm1659_vm5, %v1741_v5, %v1740_v3  ;;  %v4968_v3 = vld [vmem:[%s7284_s2 + $0x60] sm:$0xff]  ;;  %v2341_v5 = vand.u32 4294901760, %v6759_v39 }
 0x38a   :  { %v1745_v7 = vsel %vm1658_vm6, %v6707_v55, %v1742_v6  ;;  %v2348_v6 = vand.u32 4294901760, %v6761_v20  ;;  %v2272_v18 = vand.u32 4294901760, %v4968_v3 }
 0x38b   :  { %6271 = vcosq.f32 %v1745_v7 }
 0x38c   :  { %6273 = vsinq.f32 %v1745_v7  ;;  %v6789_v7 = vpack.c.bf16 %v2266_v56, %v2263_v53 }
 0x395   :  { %v6272_v21 = vpop.eup %6271 }
 0x396   :  { %v6274_v22 = vpop.eup %6273  ;;  %v1756_v10 = vxor.u32 2147483648, %v6272_v21 }
 0x397   :  { %v1753_v24 = vxor.u32 2147483648, %v6274_v22 }
 0x398   :  { %v1757_v11 = vsel %vm1755_vm7, %v1756_v10, %v6274_v22  ;;  %v2349_v22 = vsub.f32 %v6761_v20, %v2348_v6  ;;  %v6804_v10 = vsub.f32 %v4967_v1, %v2269_v12 }
 0x399   :  { %v1754_v16 = vsel %vm1752_vm8, %v6272_v21, %v1753_v24  ;;  %v2342_v21 = vsub.f32 %v6759_v39, %v2341_v5  ;;  %v6806_v24 = vsub.f32 %v4968_v3, %v2272_v18  ;;  %v6013_v3 = vpack.c.bf16 %v6761_v20, %v6759_v39 }
 0x39a   :  { %v1758_v62 = vsel %vm1751_vm9, %v1754_v16, %v1757_v11  ;;  %v2362_v16 = vand.u32 4294901760, %v6785_v8  ;;  %v2369_v26 = vand.u32 4294901760, %v6804_v10 }
 0x39b   :  { %v6739_v17 = vsel %vm1749_vm10, nan, %v1758_v62  ;;  %v5983_v62 = vpack.c.bf16 %v1857_v36, %v1850_v33  ;;  %v2343_v29 = vand.u32 4294901760, %v2342_v21  ;;  %v2376_v33 = vand.u32 4294901760, %v6806_v24 }
 0x39c   :  { %v1766_v28 = vsel %vm173_vm14, %v6739_v17, 0  ;;  %v2363_v25 = vsub.f32 %v6785_v8, %v2362_v16  ;;  %v6831_v36 = vand.u32 4294901760, %v2254_v15  ;;  %v2370_v30 = vsub.f32 %v6804_v10, %v2369_v26 }
 0x39d   :  { %v6749_v35 = vand.u32 4294901760, %v1766_v28  ;;  %v2377_v32 = vsub.f32 %v6806_v24, %v2376_v33  ;;  %v6037_v39 = vpack.c.bf16 %v2376_v33, %v2369_v26  ;;  %v4995_v33 = vld [vmem:[%s7281_s3 + $0x40] sm:$0xff] }
 0x39f   :  { %v1838_v34 = vsub.f32 %v1766_v28, %v6749_v35  ;;  %5492 = vmatmul.mubr.f32.vlgmr.msra.gmra.mrb[2].mxu1 %v6749_v35  ;;  %v6818_v28 = vpack.c.bf16 %v2272_v18, %v2269_v12  ;;  %v6031_v12 = vpack.c.bf16 %v2348_v6, %v2341_v5 }
 0x3a0   :  { %5972 = vmatpush3.bf16.msra.mxu1 %v5971_v41  ;;  %5502 = vmatprep.mubr.msk.f32.mxu1 %vm6292_vm0, %v6293_v4  ;;  %v6772_v41 = vpack.c.bf16 %v2260_v38, %v2257_v43  ;;  %v5986_v38 = vpack.c.bf16 %v1871_v14, %v1864_v37  ;;  %v2371_v14 = vand.u32 4294901760, %v2370_v30  ;;  %v4997_v30 = vld [vmem:[%s7281_s3 + $0x50] sm:$0xff] }
 0x3a1   :  { %5973 = vmatprep.subr.bf16.mxu1 %v6291_v0  ;;  %v1839_v13 = vand.u32 4294901760, %v1838_v34 }
 0x3a3   :  { %v1840_v51 = vsub.f32 %v1838_v34, %v1839_v13 }
 0x3a4   :  { %5975 = vmatpush3.bf16.msra.mxu1 %v5974_v19  ;;  %v6783_v19 = vsub.f32 %v4965_v40, %v2263_v53  ;;  %v6841_v40 = vsub.f32 %v2254_v15, %v6831_v36  ;;  %v2378_v53 = vand.u32 4294901760, %v2377_v32  ;;  %v4998_v32 = vld [vmem:[%s7281_s3 + $0x58] sm:$0xff] }
 0x3a5   :  { %5976 = vmatprep.subr.bf16.mxu1 %v6291_v0  ;;  %v1841_v63 = vand.u32 4294901760, %v1840_v51  ;;  %v2364_v51 = vand.u32 4294901760, %v2363_v25 }
 0x3a6   :  { %v2355_v11 = vand.u32 4294901760, %v6783_v19  ;;  %v2383_v56 = vand.u32 4294901760, %v6841_v40 }
 0x3a7   :  { %5481 = vmatmul.mubr.f32.vlgmr.msra.gmra.mrb[4].mxu0 %v1841_v63  ;;  %5503 = vmatmul.mubr.f32.vlgmr.msra.gmra.mrb[2].mxu1 %v1838_v34  ;;  %v2350_v34 = vand.u32 4294901760, %v2349_v22  ;;  %v6010_v63 = vpack.c.bf16 %v2378_v53, %v2371_v14  ;;  %v3360_v14 = vand.u32 4294901760, %v4998_v32 }
 0x3a8   :  { %5978 = vmatpush3.bf16.msra.mxu1 %v6674_v31  ;;  %5996 = vmatpush3.bf16.msra.mxu0 %v6772_v41  ;;  %v2356_v43 = vsub.f32 %v6783_v19, %v2355_v11  ;;  %v2384_v1 = vsub.f32 %v6841_v40, %v2383_v56  ;;  %v6034_v18 = vpack.c.bf16 %v2362_v16, %v2355_v11 }
 0x3a9   :  { %5979 = vmatprep.subr.bf16.mxu1 %v6291_v0  ;;  %5997 = vmatprep.subr.bf16.mxu0 %v6291_v0  ;;  %v6004_v49 = vpack.c.bf16 %v2350_v34, %v2343_v29 }
 0x3aa   :  { %5513 = vmatprep.mubr.msk.f32.mxu1 %vm6292_vm0, %v6293_v4  ;;  %5552 = vmatprep.mubr.msk.f32.mxu0 %vm6292_vm0, %v6293_v4 }
 0x3ac   :  { %5981 = vmatpush3.bf16.msra.mxu1 %v6700_v47  ;;  %5999 = vmatpush3.bf16.msra.mxu0 %v6789_v7 }
 0x3ad   :  { %5982 = vmatprep.subr.bf16.mxu1 %v6291_v0  ;;  %6000 = vmatprep.subr.bf16.mxu0 %v6291_v0 }
 0x3af   :  { %5514 = vmatmul.mubr.f32.vlgmr.msra.gmra.mrb[2].mxu1 %v1839_v13  ;;  %v2357_v13 = vand.u32 4294901760, %v2356_v43 }
 0x3b0   :  { %5984 = vmatpush3.bf16.msra.mxu1 %v5983_v62  ;;  %6002 = vmatpush3.bf16.msra.mxu0 %v6818_v28 }
 0x3b1   :  { %5985 = vmatprep.subr.bf16.mxu1 %v6291_v0  ;;  %5550 = vmatprep.subr.mxu0 %v6293_v4  ;;  %v6007_v37 = vpack.c.bf16 %v2364_v51, %v2357_v13 }
 0x3b2   :  { %5524 = vmatprep.mubr.msk.f32.mxu1 %vm6292_vm0, %v6293_v4 }
 0x3b4   :  { %5987 = vmatpush3.bf16.msra.mxu1 %v5986_v38  ;;  %5551 = vmatpush3.msra.mxu0 %v6831_v36  ;;  %v3351_v38 = vand.u32 4294901760, %v4995_v33 }
 0x3b5   :  { %6003 = vmatprep.subr.bf16.mxu0 %v6291_v0  ;;  %5553 = vmatmul.mubr.f32.vlgmr.msra.gmra.mrb[6].mxu0 %v6545_v23 }
 0x3b6   :  { %6005 = vmatpush3.bf16.msra.mxu0 %v6004_v49  ;;  %5988 = vmatprep.subr.bf16.mxu1 %v6291_v0  ;;  %v6966_v13 = vsub.f32 %v4995_v33, %v3351_v38 }
 0x3b7   :  { %5525 = vmatmul.mubr.f32.vlgmr.msra.gmra.mrb[2].mxu1 %v6749_v35  ;;  %6006 = vmatprep.subr.bf16.mxu0 %v6291_v0 }
 0x3b8   :  { %5990 = vmatpush3.bf16.msra.mxu1 %v6674_v31  ;;  %5535 = vmatprep.mubr.msk.f32.mxu1 %vm6292_vm0, %v6293_v4  ;;  %v2385_v31 = vand.u32 4294901760, %v2384_v1  ;;  %v3432_v53 = vand.u32 4294901760, %v6966_v13 }
 0x3b9   :  { %5991 = vmatprep.subr.bf16.mxu1 %v6291_v0  ;;  %5569 = vmatprep.mubr.msk.f32.mxu0 %vm6292_vm0, %v6293_v4 }
 0x3ba   :  { %6008 = vmatpush3.bf16.msra.mxu0 %v6007_v37  ;;  %v3357_v37 = vand.u32 4294901760, %v4997_v30 }
 0x3bb   :  { %6009 = vmatprep.subr.bf16.mxu0 %v6291_v0 }
 0x3bc   :  { %5993 = vmatpush3.bf16.msra.mxu1 %v6700_v47  ;;  %v6016_v47 = vpack.c.bf16 %v6785_v8, %v6783_v19  ;;  %v6982_v1 = vsub.f32 %v4997_v30, %v3357_v37 }
 0x3bd   :  { %6021 = vmatprep.subr.bf16.mxu1 %v6291_v0 }
 0x3be   :  { %6011 = vmatpush3.bf16.msra.mxu0 %v6010_v63  ;;  %v6980_v63 = vpack.c.bf16 %v3360_v14, %v3357_v37 }
 0x3bf   :  { %5536 = vmatmul.mubr.f32.vlgmr.msra.gmra.mrb[2].mxu1 %v6749_v35  ;;  %5567 = vmatprep.subr.mxu0 %v6293_v4  ;;  %v6019_v35 = vpack.c.bf16 %v6806_v24, %v6804_v10 }
 0x3c0   :  { %6023 = vmatpush3.bf16.msra.mxu1 %v6772_v41  ;;  %5603 = vmatprep.mubr.msk.f32.mxu1 %vm6292_vm0, %v6293_v4 }
 0x3c1   :  { %6024 = vmatprep.subr.bf16.mxu1 %v6291_v0 }
 0x3c2   :  { %5568 = vmatpush3.msra.mxu0 %v2385_v31  ;;  %v6984_v31 = vsub.f32 %v4998_v32, %v3360_v14 }
 0x3c3   :  { %6012 = vmatprep.subr.bf16.mxu0 %v6291_v0  ;;  %5570 = vmatmul.mubr.f32.vlgmr.msra.gmra.mrb[6].mxu0 %v6478_v44 }
 0x3c4   :  { %6014 = vmatpush3.bf16.msra.mxu0 %v6013_v3  ;;  %6026 = vmatpush3.bf16.msra.mxu1 %v6789_v7  ;;  %v3433_v3 = vsub.f32 %v6966_v13, %v3432_v53 }
 0x3c5   :  { %6015 = vmatprep.subr.bf16.mxu0 %v6291_v0  ;;  %6027 = vmatprep.subr.bf16.mxu1 %v6291_v0 }
 0x3c6   :  { %5586 = vmatprep.mubr.msk.f32.mxu0 %vm6292_vm0, %v6293_v4 }
 0x3c8   :  { %6017 = vmatpush3.bf16.msra.mxu0 %v6016_v47  ;;  %6029 = vmatpush3.bf16.msra.mxu1 %v6818_v28 }
 0x3c9   :  { %6018 = vmatprep.subr.bf16.mxu0 %v6291_v0  ;;  %5601 = vmatprep.subr.mxu1 %v6293_v4 }
 0x3cc   :  { %6020 = vmatpush3.bf16.msra.mxu0 %v6019_v35  ;;  %5602 = vmatpush3.msra.mxu1 %v6831_v36  ;;  %v3434_v35 = vand.u32 4294901760, %v3433_v3 }
 0x3cd   :  { %6030 = vmatprep.subr.bf16.mxu1 %v6291_v0  ;;  %5604 = vmatmul.mubr.f32.vlgmr.msra.gmra.mrb[4].mxu1 %v6513_v59 }
 0x3ce   :  { %6032 = vmatpush3.bf16.msra.mxu1 %v6031_v12  ;;  %5584 = vmatprep.subr.mxu0 %v6293_v4  ;;  %v3446_v12 = vand.u32 4294901760, %v6982_v1 }
 0x3cf   :  { %6033 = vmatprep.subr.bf16.mxu1 %v6291_v0  ;;  %5620 = vmatprep.mubr.msk.f32.mxu1 %vm6292_vm0, %v6293_v4 }
 0x3d0   :  { %5585 = vmatpush3.msra.mxu0 %v6841_v40 }
 0x3d1   :  { %5587 = vmatmul.mubr.f32.vlgmr.msra.gmra.mrb[6].mxu0 %v6493_v45  ;;  %5640 = vmatprep.subr.mxu0 %v6293_v4 }
 0x3d2   :  { %6035 = vmatpush3.bf16.msra.mxu1 %v6034_v18  ;;  %5642 = vmatprep.mubr.msk.f32.mxu0 %vm6292_vm0, %v6293_v4  ;;  %v3453_v18 = vand.u32 4294901760, %v6984_v31 }
 0x3d3   :  { %6036 = vmatprep.subr.bf16.mxu1 %v6291_v0 }
 0x3d6   :  { %6038 = vmatpush3.bf16.msra.mxu1 %v6037_v39 }
 0x3d7   :  { %5618 = vmatprep.subr.mxu1 %v6293_v4 }
 0x3da   :  { %5619 = vmatpush3.msra.mxu1 %v2383_v56 }
 0x3db   :  { %6039 = vmatprep.subr.bf16.mxu1 %v6291_v0  ;;  %5621 = vmatmul.mubr.f32.vlgmr.msra.gmra.mrb[4].mxu1 %v6478_v44 }
 0x3dc   :  { %6041 = vmatpush3.bf16.msra.mxu1 %v6772_v41  ;;  %5637 = vmatprep.mubr.msk.f32.mxu1 %vm6292_vm0, %v6293_v4 }
 0x3dd   :  { %6042 = vmatprep.subr.bf16.mxu1 %v6291_v0 }
 0x3e0   :  { %6044 = vmatpush3.bf16.msra.mxu1 %v6789_v7 }
 0x3e1   :  { %6045 = vmatprep.subr.bf16.mxu1 %v6291_v0 }
 0x3e4   :  { %6047 = vmatpush3.bf16.msra.mxu1 %v6818_v28 }
 0x3e5   :  { %5635 = vmatprep.subr.mxu1 %v6293_v4 }
 0x3e8   :  { %5636 = vmatpush3.msra.mxu1 %v6831_v36  ;;  %v4996_v36 = vld [vmem:[%s7281_s3 + $0x48] sm:$0xff]  ;;  %s6301_s3 = smov 64  }
 0x3e9   :  { %5638 = vmatmul.mubr.f32.vlgmr.msra.gmra.mrb[4].mxu1 %v6478_v44  ;;  %6048 = vmatprep.subr.bf16.mxu1 %v6291_v0  ;;  %v3354_v40 = vand.u32 4294901760, %v4996_v36 }
 0x3ea   :  { %5678 = vmatprep.mubr.msk.f32.mxu1 %vm6292_vm0, %v6293_v4 }
 0x3eb   :  { %v6964_v49 = vpack.c.bf16 %v3354_v40, %v3351_v38  ;;  %v6968_v51 = vsub.f32 %v4996_v36, %v3354_v40 }
 0x3ed   :  { %6050 = vmatpush3.bf16.msra.mxu1 %v6964_v49  ;;  %v3439_v56 = vand.u32 4294901760, %v6968_v51 }
 0x3ee   :  { %6051 = vmatprep.subr.bf16.mxu1 %v6291_v0 }
 0x3ef   :  { %v3440_v47 = vsub.f32 %v6968_v51, %v3439_v56 }
 0x3f1   :  { %6053 = vmatpush3.bf16.msra.mxu1 %v6980_v63  ;;  %v3441_v39 = vand.u32 4294901760, %v3440_v47 }
 0x3f2   :  { %6054 = vmatprep.subr.bf16.mxu1 %v6291_v0 }
 0x47a   :  { %v1843_v20 = vpop.f32.mrb[4].mxu0 }
 0x47b   :  { %v5482_v41 = vpop.f32.mrb[5].mxu0 }
 0x47c   :  { %v3454_v41 = vsub.f32 %v6984_v31, %v3453_v18 }
 0x492   :  { %v2249_v5 = vpop.f32.mrb[2].mxu1 }
 0x493   :  { %v6139_v6 = vadd.f32 %v2249_v5, %v1843_v20  ;;  %v5537_v19 = vpop.f32.mrb[3].mxu1  ;;  %v3447_v20 = vsub.f32 %v6982_v1, %v3446_v12  ;;  %v6994_v5 = vpack.c.bf16 %v3441_v39, %v3434_v35 }
 0x494   :  { %v3455_v19 = vand.u32 4294901760, %v3454_v41 }
 0x4a4   :  { %v2526_v8 = vpop.f32.mrb[6].mxu0 }
 0x4a5   :  { %v6140_v7 = vadd.f32 %v6139_v6, %v2526_v8  ;;  %v5588_v9 = vpop.f32.mrb[7].mxu0  ;;  %v3448_v6 = vand.u32 4294901760, %v3447_v20 }
 0x4a6   :  { %v6064_v9 = vpack.c.bf16 %v6984_v31, %v6982_v1  ;;  %v4972_v31 = vld [vmem:[%s7284_s2 + $0x80] sm:$0xff] }
 0x4a7   :  { %v6996_v8 = vpack.c.bf16 %v3455_v19, %v3448_v6 }
 0x4bc   :  { %v2776_v21 = vpop.f32.mrb[4].mxu1 }
 0x4bd   :  { %v6141_v22 = vadd.f32 %v6140_v7, %v2776_v21  ;;  %v5639_v10 = vpop.f32.mrb[5].mxu1  ;;  %v6061_v7 = vpack.c.bf16 %v6968_v51, %v6966_v13  ;;  %v7002_v21 = vpack.c.bf16 %v3439_v56, %v3432_v53  ;;  %v4971_v13 = vld [vmem:[%s7284_s2 + $0x78] sm:$0xff] }
 0x4be   :  { %v3842_v1 = vand.u32 4294901760, %v4971_v13 }
 0x4bf   :  { %v4990_v24 = vmul.f32 -1.442695, %v6141_v22 }
 0x4c1   :  { %6275 = vpow2.f32 %v4990_v24 }
 0x4cb   :  { %v6276_v11 = vpop.eup %6275 }
 0x4cc   :  { %v2783_v16 = vadd.f32 1.0, %v6276_v11 }
 0x4ce   :  { %6277 = vrcp.f32 %v2783_v16 }
 0x4d8   :  { %v6931_v62 = vpop.eup %6277 }
 0x4d9   :  { %2788 = vperm.xlu0 %6261, %v6931_v62  }
 0x558   :  { %v2789_v28 = vpop.permute.xlu0 %2788 }
 0x559   :  { %v2791_v15 = vmul.f32 %v6141_v22, %v2789_v28  ;;  %v7004_v22 = vpack.c.bf16 %v3453_v18, %v3446_v12 }
 0x55b   :  { %v2793_v29 = vand.u32 4294901760, %v2791_v15 }
 0x55d   :  { %v2870_v34 = vsub.f32 %v2791_v15, %v2793_v29  ;;  %5641 = vmatpush3.msra.mxu0 %v2793_v29 }
 0x55e   :  { %5643 = vmatmul.mubr.f32.vlgmr.msra.gmra.mrb[8].mxu0 %v6630_v2  ;;  %5645 = vmatprep.subr.mxu0 %v6293_v4 }
 0x55f   :  { %v2871_v43 = vand.u32 4294901760, %v2870_v34  ;;  %5647 = vmatprep.mubr.msk.f32.mxu0 %vm6292_vm0, %v6293_v4 }
 0x561   :  { %v2872_v25 = vsub.f32 %v2870_v34, %v2871_v43 }
 0x563   :  { %v2873_v26 = vand.u32 4294901760, %v2872_v25 }
 0x565   :  { %5646 = vmatpush3.msra.mxu0 %v2873_v26 }
 0x566   :  { %5648 = vmatmul.mubr.f32.vlgmr.msra.gmra.mrb[8].mxu0 %v6620_v57  ;;  %5650 = vmatprep.subr.mxu0 %v6293_v4 }
 0x567   :  { %5651 = vmatpush3.msra.mxu0 %v2870_v34  ;;  %5652 = vmatprep.mubr.msk.f32.mxu0 %vm6292_vm0, %v6293_v4 }
 0x568   :  { %5655 = vmatprep.subr.mxu0 %v6293_v4 }
 0x56e   :  { %5653 = vmatmul.mubr.f32.vlgmr.msra.gmra.mrb[8].mxu0 %v6623_v58 }
 0x56f   :  { %5656 = vmatpush3.msra.mxu0 %v2793_v29  ;;  %5657 = vmatprep.mubr.msk.f32.mxu0 %vm6292_vm0, %v6293_v4 }
 0x570   :  { %5660 = vmatprep.subr.mxu0 %v6293_v4 }
 0x576   :  { %5658 = vmatmul.mubr.f32.vlgmr.msra.gmra.mrb[8].mxu0 %v6626_v60 }
 0x577   :  { %5661 = vmatpush3.msra.mxu0 %v2871_v43  ;;  %5662 = vmatprep.mubr.msk.f32.mxu0 %vm6292_vm0, %v6293_v4 }
 0x578   :  { %5665 = vmatprep.subr.mxu0 %v6293_v4 }
 0x57e   :  { %5663 = vmatmul.mubr.f32.vlgmr.msra.gmra.mrb[8].mxu0 %v6620_v57 }
 0x57f   :  { %5666 = vmatpush3.msra.mxu0 %v2793_v29  ;;  %5667 = vmatprep.mubr.msk.f32.mxu0 %vm6292_vm0, %v6293_v4 }
 0x580   :  { %5838 = vmatprep.subr.mxu0 %v6293_v4 }
 0x586   :  { %5668 = vmatmul.mubr.f32.vlgmr.msra.gmra.mrb[8].mxu0 %v6620_v57 }
 0x587   :  { %5840 = vmatprep.mubr.msk.f32.mxu0 %vm6292_vm0, %v6293_v4 }
 0x659   :  { %v3234_v10 = vpop.f32.mrb[8].mxu0 }
 0x65a   :  { %v7007_v24 = vsub.f32 %v6707_v55, %v3234_v10  ;;  %v5669_v11 = vpop.f32.mrb[9].mxu0 }
 0x65c   :  { %v3242_v16 = vand.u32 2139095040, %v7007_v24  ;;  %v3239_v34 = vand.u32 2147483647, %v7007_v24  ;;  %vm3241_vm5 = vcmp.lt.s32.totalorder %v7007_v24, 0  ;;  %vm3331_vm10 = vweird.f32 %v7007_v24 }
 0x65e   :  { %v3243_v28 = vshrl.u32 %v3242_v16, 23  ;;  %v3246_v33 = vand.u32 8388607, %v3239_v34  ;;  %vm3240_vm6 = vcmp.le.f32.partialorder %v3239_v34, 0.7853982 }
 0x660   :  { %v4991_v15 = vadd.s32 4294967169, %v3243_v28  ;;  %v3247_v47 = vor.u32 8388608, %v3246_v33 }
 0x662   :  { %v3249_v29 = vadd.s32 1, %v4991_v15 }
 0x664   :  { %vm3250_vm11 = vcmp.gt.s32.totalorder %v3249_v29, 0 }
 0x665   :  { %v3251_v43 = vsel %vm3250_vm11, %v3249_v29, 0  ;;  %v3287_v29 = vshll.u32 %v3247_v47, 8  ;;  %vm4951_vm11 = vcmask 15360  }
 0x666   :  { %v3253_v25 = vand.u32 31, %v3251_v43  ;;  %v3252_v36 = vshrl.u32 %v3251_v43, 5 }
 0x668   :  { %v3254_v26 = vsub.s32 32, %v3253_v25  ;;  %v3256_v38 = vshll.u32 %v6294_v46, %v3253_v25  ;;  %v3259_v55 = vshll.u32 %v6295_v48, %v3253_v25  ;;  %v3262_v32 = vshll.u32 %v6296_v50, %v3253_v25 }
 0x669   :  { %v3265_v14 = vshll.u32 %v6297_v52, %v3253_v25  ;;  %v3268_v56 = vshll.u32 %v6298_v54, %v3253_v25  ;;  %vm3271_vm12 = vcmp.lt.s32.totalorder %v3252_v36, 1  ;;  %vm3274_vm13 = vcmp.lt.s32.totalorder %v3252_v36, 4 }
 0x66a   :  { %v3257_v40 = vshrl.u32 %v6295_v48, %v3254_v26  ;;  %v3260_v30 = vshrl.u32 %v6296_v50, %v3254_v26  ;;  %v3263_v37 = vshrl.u32 %v6297_v52, %v3254_v26  ;;  %v3266_v53 = vshrl.u32 %v6298_v54, %v3254_v26 }
 0x66b   :  { %v3269_v3 = vshrl.u32 %v6299_v61, %v3254_v26  ;;  %v3255_v10 = vshrl.u32 %v6294_v46, %v3254_v26  ;;  %vm3273_vm15 = vcmp.lt.s32.totalorder %v3252_v36, 3  ;;  %vm3272_vm2 = vcmp.lt.s32.totalorder %v3252_v36, 2 }
 0x66c   :  { %v3258_v35 = vor.u32 %v3257_v40, %v3256_v38  ;;  %v3261_v12 = vor.u32 %v3260_v30, %v3259_v55  ;;  %v3264_v18 = vor.u32 %v3263_v37, %v3262_v32  ;;  %v3267_v39 = vor.u32 %v3266_v53, %v3265_v14 }
 0x66d   :  { %v3270_v20 = vor.u32 %v3269_v3, %v3268_v56 }
 0x66e   :  { %v3276_v41 = vsel %vm3274_vm13, %v3264_v18, 2102212464  ;;  %v3279_v6 = vsel %vm3271_vm12, %v3258_v35, %v3261_v12  ;;  %v3283_v19 = vsel %vm3271_vm12, %v3261_v12, %v3264_v18  ;;  %v3280_v11 = vsel %vm3274_vm13, %v3267_v39, 920167782 }
 0x66f   :  { %v3284_v16 = vsel %vm3274_vm13, %v3270_v20, 1326507024  ;;  %v3281_v28 = vsel %vm3273_vm15, %v3264_v18, %v3280_v11  ;;  %v3275_v43 = vsel %vm3271_vm12, %v3255_v10, %v3258_v35  ;;  %v3277_v25 = vsel %vm3273_vm15, %v3261_v12, %v3276_v41 }
 0x670   :  { %v3285_v15 = vsel %vm3273_vm15, %v3267_v39, %v3284_v16  ;;  %v3282_v33 = vsel %vm3272_vm2, %v3279_v6, %v3281_v28  ;;  %v3278_v37 = vsel %vm3272_vm2, %v3275_v43, %v3277_v25  ;;  %vm4953_vm12 = vcmask 23552  }
 0x671   :  { %v3286_v38 = vsel %vm3272_vm2, %v3283_v19, %v3285_v15  ;;  %v7027_v30 = vmul.u32.u64.low %v3287_v29, %v3282_v33  ;;  %v7028_v32 = vmul.u32.u64.high %v3287_v29, %v3282_v33, %v7027_v30  ;;  %v3294_v14 = vmul.u32 %v3287_v29, %v3278_v37 }
 0x672   :  { %v7024_v55 = vmul.u32.u64.low %v3287_v29, %v3286_v38  ;;  %v7025_v40 = vmul.u32.u64.high %v3287_v29, %v3286_v38, %v7024_v55 }
 0x673   :  { %v3297_v26 = vadd.s32 1, %v7028_v32 }
 0x674   :  { %vm3296_vm3 = vc.u32 %v7025_v40, %v7027_v30  ;;  %v3295_v6 = vadd.s32 %v7027_v30, %v7025_v40 }
 0x675   :  { %v3298_v36 = vsel %vm3296_vm3, %v3297_v26, %v7028_v32 }
 0x676   :  { %v3299_v53 = vadd.s32 %v3298_v36, %v3294_v14 }
 0x678   :  { %v3300_v56 = vadd.s32 536870912, %v3299_v53 }
 0x67a   :  { %v3301_v3 = vshrl.u32 %v3300_v56, 30 }
 0x67c   :  { %v3302_v47 = vshll.u32 %v3301_v3, 30  ;;  %v3325_v37 = vsub.s32 4, %v3301_v3 }
 0x67e   :  { %v3303_v35 = vsub.s32 %v3299_v53, %v3302_v47  ;;  %v3326_v30 = vsel %vm3241_vm5, %v3325_v37, %v3301_v3 }
 0x67f   :  { %v3328_v26 = vsel %vm3240_vm6, 0, %v3326_v30 }
 0x680   :  { %v3305_v12 = vsub.s32 0, %v3303_v35  ;;  %v3332_v14 = vand.u32 3, %v3328_v26 }
 0x682   :  { %v4992_v18 = vmin.u32 %v3305_v12, %v3303_v35  ;;  %vm3337_vm7 = vcmp.eq.s32.totalorder %v3332_v14, 2  ;;  %vm3334_vm8 = vcmp.eq.s32.totalorder %v3332_v14, 0  ;;  %vm3333_vm9 = vcmp.lt.s32.totalorder %v3332_v14, 2 }
 0x684   :  { %v3307_v39 = vclz %v4992_v18 }
 0x686   :  { %v4993_v20 = vadd.s32 4294967294, %v3307_v39 }
 0x688   :  { %vm4994_vm4 = vcmp.lt.s32.totalorder %v4993_v20, 0 }
 0x689   :  { %v3310_v41 = vsel %vm4994_vm4, 0, %v4993_v20 }
 0x68a   :  { %v3311_v19 = vsub.s32 32, %v3310_v41  ;;  %v3315_v10 = vsub.s32 4294967266, %v3310_v41  ;;  %v3312_v11 = vshll.u32 %v3303_v35, %v3310_v41 }
 0x68c   :  { %v3313_v16 = vshrl.u32 %v3295_v6, %v3311_v19  ;;  %v3316_v28 = vadd.s32 127, %v3315_v10 }
 0x68e   :  { %v3314_v15 = vor.u32 %v3313_v16, %v3312_v11  ;;  %v3317_v29 = vshll.u32 %v3316_v28, 23  ;;  %v4975_v11 = vld [vmem:[%s7284_s2 + $0x98] sm:$0xff] }
 0x690   :  { %v3318_v43 = vor.u32 4788187, %v3317_v29  ;;  %v3321_v33 = vcvt.s32.f32 %v3314_v15 }
 0x692   :  { %v3319_v25 = vand.u32 2147483647, %v3318_v43  ;;  %v3854_v43 = vand.u32 4294901760, %v4975_v11 }
 0x694   :  { %v3322_v38 = vmul.f32 %v3321_v33, %v3319_v25  ;;  %v4976_v33 = vld [vmem:[%s7284_s2 + $0xa0] sm:$0x1] }
 0x695   :  { %v3836_v26 = vsel %vm666_vm1, %v4976_v33, 0  ;;  %vm4949_vm1 = vcmask 7168  }
 0x696   :  { %v3323_v55 = vxor.u32 2147483648, %v3322_v38 }
 0x698   :  { %v3324_v32 = vsel %vm3241_vm5, %v3323_v55, %v3322_v38  ;;  %v7117_v55 = vsub.f32 %v4975_v11, %v3854_v43 }
 0x699   :  { %v3327_v40 = vsel %vm3240_vm6, %v7007_v24, %v3324_v32 }
 0x69a   :  { %6279 = vcosq.f32 %v3327_v40 }
 0x69b   :  { %6281 = vsinq.f32 %v3327_v40 }
 0x6a4   :  { %v6280_v36 = vpop.eup %6279 }
 0x6a5   :  { %v6282_v53 = vpop.eup %6281  ;;  %v3338_v56 = vxor.u32 2147483648, %v6280_v36 }
 0x6a6   :  { %v3335_v47 = vxor.u32 2147483648, %v6282_v53 }
 0x6a7   :  { %v3339_v35 = vsel %vm3337_vm7, %v3338_v56, %v6282_v53 }
 0x6a8   :  { %v3336_v12 = vsel %vm3334_vm8, %v6280_v36, %v3335_v47 }
 0x6a9   :  { %v3340_v34 = vsel %vm3333_vm9, %v3336_v12, %v3339_v35  ;;  %v3958_v35 = vand.u32 4294901760, %v7117_v55  ;;  %v7139_v12 = vand.u32 4294901760, %v3836_v26 }
 0x6aa   :  { %v3341_v18 = vsel %vm3331_vm10, nan, %v3340_v34 }
 0x6ab   :  { %4927 = vrot.lane.b32.xlu0 %v3341_v18, %s6301_s3  ;;  %v3348_v39 = vsel %vm173_vm14, %v3341_v18, 0  ;;  %v3964_v34 = vsub.f32 %v3836_v26, %v7139_v12 }
 0x6ac   :  { %v3419_v3 = vand.u32 4294901760, %v3348_v39 }
 0x6ae   :  { %v3420_v20 = vsub.f32 %v3348_v39, %v3419_v3 }
 0x6af   :  { %4943 = vrot.lane.b32.xlu0 %v6931_v62, %s6302_s20  ;;  %v4970_v62 = vld [vmem:[%s7284_s2 + $0x70] sm:$0xff] }
 0x6b0   :  { %v3421_v41 = vand.u32 4294901760, %v3420_v20  ;;  %v3839_v51 = vand.u32 4294901760, %v4970_v62 }
 0x6b2   :  { %v3422_v6 = vsub.f32 %v3420_v20, %v3421_v41 }
 0x6b4   :  { %v3423_v19 = vand.u32 4294901760, %v3422_v6 }
 0x6b6   :  { %5679 = vmatmul.mubr.f32.vlgmr.msra.gmra.mrb[6].mxu1 %v3423_v19 }
 0x6b7   :  { %6056 = vmatpush3.bf16.msra.mxu1 %v6994_v5  ;;  %5689 = vmatprep.mubr.msk.f32.mxu1 %vm6292_vm0, %v6293_v4  ;;  %v4973_v5 = vld [vmem:[%s7284_s2 + $0x88] sm:$0xff] }
 0x6b8   :  { %6057 = vmatprep.subr.bf16.mxu1 %v6291_v0 }
 0x6bb   :  { %6059 = vmatpush3.bf16.msra.mxu1 %v6996_v8  ;;  %v7085_v8 = vsub.f32 %v4970_v62, %v3839_v51 }
 0x6bc   :  { %6060 = vmatprep.subr.bf16.mxu1 %v6291_v0 }
 0x6bd   :  { %v3923_v28 = vand.u32 4294901760, %v7085_v8 }
 0x6be   :  { %5690 = vmatmul.mubr.f32.vlgmr.msra.gmra.mrb[6].mxu1 %v3419_v3 }
 0x6bf   :  { %6062 = vmatpush3.bf16.msra.mxu1 %v6061_v7  ;;  %5700 = vmatprep.mubr.msk.f32.mxu1 %vm6292_vm0, %v6293_v4  ;;  %v7087_v7 = vsub.f32 %v4971_v13, %v3842_v1  ;;  %v3924_v32 = vsub.f32 %v7085_v8, %v3923_v28  ;;  %v3965_v13 = vand.u32 4294901760, %v3964_v34 }
 0x6c0   :  { %6063 = vmatprep.subr.bf16.mxu1 %v6291_v0 }
 0x6c1   :  { %v3925_v53 = vand.u32 4294901760, %v3924_v32 }
 0x6c3   :  { %6065 = vmatpush3.bf16.msra.mxu1 %v6064_v9  ;;  %v7090_v9 = vpack.c.bf16 %v3842_v1, %v3839_v51  ;;  %v3966_v1 = vsub.f32 %v3964_v34, %v3965_v13 }
 0x6c4   :  { %6066 = vmatprep.subr.bf16.mxu1 %v6291_v0 }
 0x6c6   :  { %5701 = vmatmul.mubr.f32.vlgmr.msra.gmra.mrb[6].mxu1 %v3420_v20 }
 0x6c7   :  { %6068 = vmatpush3.bf16.msra.mxu1 %v6964_v49  ;;  %5711 = vmatprep.mubr.msk.f32.mxu1 %vm6292_vm0, %v6293_v4 }
 0x6c8   :  { %6069 = vmatprep.subr.bf16.mxu1 %v6291_v0 }
 0x6cb   :  { %6071 = vmatpush3.bf16.msra.mxu1 %v6980_v63 }
 0x6cc   :  { %6072 = vmatprep.subr.bf16.mxu1 %v6291_v0 }
 0x6ce   :  { %5712 = vmatmul.mubr.f32.vlgmr.msra.gmra.mrb[6].mxu1 %v3421_v41  ;;  %v3959_v41 = vsub.f32 %v7117_v55, %v3958_v35 }
 0x6cf   :  { %6074 = vmatpush3.bf16.msra.mxu1 %v7002_v21  ;;  %5722 = vmatprep.mubr.msk.f32.mxu1 %vm6292_vm0, %v6293_v4  ;;  %v3848_v21 = vand.u32 4294901760, %v4973_v5 }
 0x6d0   :  { %6075 = vmatprep.subr.bf16.mxu1 %v6291_v0  ;;  %v3960_v62 = vand.u32 4294901760, %v3959_v41 }
 0x6d1   :  { %v7101_v16 = vsub.f32 %v4973_v5, %v3848_v21 }
 0x6d3   :  { %6077 = vmatpush3.bf16.msra.mxu1 %v7004_v22  ;;  %v4974_v22 = vld [vmem:[%s7284_s2 + $0x90] sm:$0xff]  ;;  %v3944_v40 = vand.u32 4294901760, %v7101_v16  ;;  %s6303_s2 = smov 98  }
 0x6d4   :  { %6078 = vmatprep.subr.bf16.mxu1 %v6291_v0  ;;  %v3851_v15 = vand.u32 4294901760, %v4974_v22 }
 0x6d5   :  { %v3945_v47 = vsub.f32 %v7101_v16, %v3944_v40 }
 0x6d6   :  { %5723 = vmatmul.mubr.f32.vlgmr.msra.gmra.mrb[6].mxu1 %v3419_v3  ;;  %v7111_v25 = vsub.f32 %v4974_v22, %v3851_v15  ;;  %v7127_v30 = vpack.c.bf16 %v3854_v43, %v3851_v15 }
 0x6d7   :  { %6080 = vmatpush3.bf16.msra.mxu1 %v6964_v49  ;;  %5733 = vmatprep.mubr.msk.f32.mxu1 %vm6292_vm0, %v6293_v4  ;;  %v3845_v49 = vand.u32 4294901760, %v4972_v31 }
 0x6d8   :  { %6081 = vmatprep.subr.bf16.mxu1 %v6291_v0  ;;  %v3951_v36 = vand.u32 4294901760, %v7111_v25 }
 0x6d9   :  { %v7096_v10 = vsub.f32 %v4972_v31, %v3845_v49  ;;  %v7106_v29 = vpack.c.bf16 %v3848_v21, %v3845_v49  ;;  %v3967_v31 = vand.u32 4294901760, %v3966_v1  ;;  %v6109_v49 = vpack.c.bf16 %v7117_v55, %v7111_v25 }
 0x6da   :  { %v3952_v20 = vsub.f32 %v7111_v25, %v3951_v36 }
 0x6db   :  { %6083 = vmatpush3.bf16.msra.mxu1 %v6980_v63  ;;  %v3930_v63 = vand.u32 4294901760, %v7087_v7  ;;  %v3937_v38 = vand.u32 4294901760, %v7096_v10  ;;  %v6106_v5 = vpack.c.bf16 %v7101_v16, %v7096_v10 }
 0x6dc   :  { %6084 = vmatprep.subr.bf16.mxu1 %v6291_v0  ;;  %v3953_v19 = vand.u32 4294901760, %v3952_v20 }
 0x6dd   :  { %v3931_v37 = vsub.f32 %v7087_v7, %v3930_v63  ;;  %v3938_v14 = vsub.f32 %v7096_v10, %v3937_v38  ;;  %v6124_v21 = vpack.c.bf16 %v3944_v40, %v3937_v38 }
 0x6de   :  { %5734 = vmatmul.mubr.f32.vlgmr.msra.gmra.mrb[6].mxu1 %v3419_v3  ;;  %v3946_v3 = vand.u32 4294901760, %v3945_v47  ;;  %v6100_v51 = vpack.c.bf16 %v3960_v62, %v3953_v19 }
 0x6df   :  { %6086 = vmatpush3.bf16.msra.mxu1 %v7090_v9  ;;  %5750 = vmatprep.mubr.msk.f32.mxu1 %vm6292_vm0, %v6293_v4  ;;  %v3932_v56 = vand.u32 4294901760, %v3931_v37  ;;  %v3939_v18 = vand.u32 4294901760, %v3938_v14 }
 0x6e0   :  { %6087 = vmatprep.subr.bf16.mxu1 %v6291_v0 }
 0x6e1   :  { %v6094_v39 = vpack.c.bf16 %v3932_v56, %v3925_v53  ;;  %v6097_v6 = vpack.c.bf16 %v3946_v3, %v3939_v18 }
 0x6e3   :  { %6089 = vmatpush3.bf16.msra.mxu1 %v7106_v29 }
 0x6e4   :  { %6090 = vmatprep.subr.bf16.mxu1 %v6291_v0 }
 0x6e7   :  { %6092 = vmatpush3.bf16.msra.mxu1 %v7127_v30 }
 0x6e8   :  { %5748 = vmatprep.subr.mxu1 %v6293_v4 }
 0x6eb   :  { %5749 = vmatpush3.msra.mxu1 %v7139_v12 }
 0x6ec   :  { %6093 = vmatprep.subr.bf16.mxu1 %v6291_v0  ;;  %5751 = vmatmul.mubr.f32.vlgmr.msra.gmra.mrb[6].mxu1 %v6545_v23  ;;  %v6103_v23 = vpack.c.bf16 %v7087_v7, %v7085_v8  ;;  %v6127_v8 = vpack.c.bf16 %v3958_v35, %v3951_v36 }
 0x6ed   :  { %6095 = vmatpush3.bf16.msra.mxu1 %v6094_v39  ;;  %5767 = vmatprep.mubr.msk.f32.mxu1 %vm6292_vm0, %v6293_v4 }
 0x6ee   :  { %6096 = vmatprep.subr.bf16.mxu1 %v6291_v0 }
 0x6f1   :  { %6098 = vmatpush3.bf16.msra.mxu1 %v6097_v6 }
 0x6f2   :  { %6099 = vmatprep.subr.bf16.mxu1 %v6291_v0 }
 0x6f5   :  { %6101 = vmatpush3.bf16.msra.mxu1 %v6100_v51 }
 0x6f6   :  { %5765 = vmatprep.subr.mxu1 %v6293_v4 }
 0x6f9   :  { %5766 = vmatpush3.msra.mxu1 %v3967_v31 }
 0x6fa   :  { %6102 = vmatprep.subr.bf16.mxu1 %v6291_v0  ;;  %5768 = vmatmul.mubr.f32.vlgmr.msra.gmra.mrb[6].mxu1 %v6478_v44 }
 0x6fb   :  { %6104 = vmatpush3.bf16.msra.mxu1 %v6103_v23  ;;  %5784 = vmatprep.mubr.msk.f32.mxu1 %vm6292_vm0, %v6293_v4 }
 0x6fc   :  { %6105 = vmatprep.subr.bf16.mxu1 %v6291_v0 }
 0x6ff   :  { %6107 = vmatpush3.bf16.msra.mxu1 %v6106_v5 }
 0x700   :  { %6108 = vmatprep.subr.bf16.mxu1 %v6291_v0 }
 0x703   :  { %6110 = vmatpush3.bf16.msra.mxu1 %v6109_v49 }
 0x704   :  { %5782 = vmatprep.subr.mxu1 %v6293_v4 }
 0x707   :  { %5783 = vmatpush3.msra.mxu1 %v3964_v34 }
 0x708   :  { %6111 = vmatprep.subr.bf16.mxu1 %v6291_v0  ;;  %5785 = vmatmul.mubr.f32.vlgmr.msra.gmra.mrb[6].mxu1 %v6493_v45  ;;  %v6121_v45 = vpack.c.bf16 %v3930_v63, %v3923_v28 }
 0x709   :  { %6113 = vmatpush3.bf16.msra.mxu1 %v7090_v9  ;;  %5801 = vmatprep.mubr.msk.f32.mxu1 %vm6292_vm0, %v6293_v4 }
 0x70a   :  { %6114 = vmatprep.subr.bf16.mxu1 %v6291_v0 }
 0x70d   :  { %6116 = vmatpush3.bf16.msra.mxu1 %v7106_v29 }
 0x70e   :  { %6117 = vmatprep.subr.bf16.mxu1 %v6291_v0 }
 0x711   :  { %6119 = vmatpush3.bf16.msra.mxu1 %v7127_v30 }
 0x712   :  { %5799 = vmatprep.subr.mxu1 %v6293_v4 }
 0x715   :  { %5800 = vmatpush3.msra.mxu1 %v7139_v12 }
 0x716   :  { %6120 = vmatprep.subr.bf16.mxu1 %v6291_v0  ;;  %5802 = vmatmul.mubr.f32.vlgmr.msra.gmra.mrb[6].mxu1 %v6513_v59 }
 0x717   :  { %6122 = vmatpush3.bf16.msra.mxu1 %v6121_v45  ;;  %5818 = vmatprep.mubr.msk.f32.mxu1 %vm6292_vm0, %v6293_v4 }
 0x718   :  { %6123 = vmatprep.subr.bf16.mxu1 %v6291_v0 }
 0x71b   :  { %6125 = vmatpush3.bf16.msra.mxu1 %v6124_v21 }
 0x71c   :  { %6126 = vmatprep.subr.bf16.mxu1 %v6291_v0 }
 0x71f   :  { %6128 = vmatpush3.bf16.msra.mxu1 %v6127_v8 }
 0x720   :  { %5816 = vmatprep.subr.mxu1 %v6293_v4 }
 0x723   :  { %5817 = vmatpush3.msra.mxu1 %v3965_v13 }
 0x724   :  { %6129 = vmatprep.subr.bf16.mxu1 %v6291_v0  ;;  %5819 = vmatmul.mubr.f32.vlgmr.msra.gmra.mrb[6].mxu1 %v6478_v44 }
 0x725   :  { %6131 = vmatpush3.bf16.msra.mxu1 %v7090_v9  ;;  %5835 = vmatprep.mubr.msk.f32.mxu1 %vm6292_vm0, %v6293_v4 }
 0x726   :  { %6132 = vmatprep.subr.bf16.mxu1 %v6291_v0 }
 0x729   :  { %6134 = vmatpush3.bf16.msra.mxu1 %v7106_v29 }
 0x72a   :  { %6135 = vmatprep.subr.bf16.mxu1 %v6291_v0  ;;  %v7212_v0 = vpop.permute.xlu0 %4927 }
 0x72d   :  { %6137 = vmatpush3.bf16.msra.mxu1 %v7127_v30 }
 0x72e   :  { %5833 = vmatprep.subr.mxu1 %v6293_v4  ;;  %v4944_v15 = vpop.permute.xlu0 %4943 }
 0x731   :  { %5834 = vmatpush3.msra.mxu1 %v7139_v12 }
 0x732   :  { %5836 = vmatmul.mubr.f32.vlgmr.msra.gmra.mrb[6].mxu1 %v6478_v44 }
 0x805   :  { %v4358_v59 = vpop.f32.mrb[6].mxu1 }
 0x806   :  { %v4999_v7 = vmul.f32 -1.442695, %v4358_v59  ;;  %v5837_v9 = vpop.f32.mrb[7].mxu1 }
 0x808   :  { %6283 = vpow2.f32 %v4999_v7 }
 0x812   :  { %v6284_v22 = vpop.eup %6283 }
 0x813   :  { %v4365_v10 = vadd.f32 1.0, %v6284_v22 }
 0x815   :  { %6285 = vrcp.f32 %v4365_v10 }
 0x81f   :  { %v6286_v11 = vpop.eup %6285 }
 0x820   :  { %4946 = vrot.lane.b32.xlu0 %v6286_v11, %s6303_s2  ;;  %4370 = vperm.xlu1 %6262, %v6286_v11  }
 0x824   :  { %4924 = vrot.lane.b32.xlu1 %v6739_v17, %s6304_s8 }
 0x828   :  { %4940 = vrot.lane.b32.xlu1 %v6615_v42, %s6305_s9 }
 0x892   :  { %v4947_v43 = vpop.permute.xlu0 %4946 }
 0x89f   :  { %v4371_v44 = vpop.permute.xlu1 %4370 }
 0x8a0   :  { %v4373_v16 = vmul.f32 %v4371_v44, %v4358_v59 }
 0x8a2   :  { %v4375_v28 = vand.u32 4294901760, %v4373_v16 }
 0x8a3   :  { %v7214_v63 = vpop.permute.xlu1 %4924 }
 0x8a4   :  { %v4452_v29 = vsub.f32 %v4373_v16, %v4375_v28  ;;  %5839 = vmatpush3.msra.mxu0 %v4375_v28 }
 0x8a5   :  { %5841 = vmatmul.mubr.f32.vlgmr.msra.gmra.mrb[10].mxu0 %v6630_v2  ;;  %5843 = vmatprep.subr.mxu0 %v6293_v4 }
 0x8a6   :  { %v4453_v17 = vand.u32 4294901760, %v4452_v29  ;;  %5845 = vmatprep.mubr.msk.f32.mxu0 %vm6292_vm0, %v6293_v4 }
 0x8a7   :  { %v4941_v42 = vpop.permute.xlu1 %4940 }
 0x8a8   :  { %v4454_v25 = vsub.f32 %v4452_v29, %v4453_v17  ;;  %v4950_v33 = vsel %vm4949_vm1, %v4941_v42, %v4944_v15 }
 0x8a9   :  { %v4952_v38 = vsel %vm4951_vm11, %v4950_v33, %v4947_v43  ;;  %vm4935_vm11 = vcmask 523264  }
 0x8aa   :  { %4954 = vst.msk [vmem:[%s7285_s5] sm:$0xff] %vm4953_vm12, %v4952_v38  ;;  %v4455_v55 = vand.u32 4294901760, %v4454_v25  ;;  %vm4937_vm12 = vcmask 785408  }
 0x8ac   :  { %5844 = vmatpush3.msra.mxu0 %v4455_v55 }
 0x8ad   :  { %5846 = vmatmul.mubr.f32.vlgmr.msra.gmra.mrb[10].mxu0 %v6620_v57  ;;  %5848 = vmatprep.subr.mxu0 %v6293_v4 }
 0x8ae   :  { %5849 = vmatpush3.msra.mxu0 %v4452_v29  ;;  %5850 = vmatprep.mubr.msk.f32.mxu0 %vm6292_vm0, %v6293_v4 }
 0x8af   :  { %5853 = vmatprep.subr.mxu0 %v6293_v4 }
 0x8b5   :  { %5851 = vmatmul.mubr.f32.vlgmr.msra.gmra.mrb[10].mxu0 %v6623_v58 }
 0x8b6   :  { %5854 = vmatpush3.msra.mxu0 %v4375_v28  ;;  %5855 = vmatprep.mubr.msk.f32.mxu0 %vm6292_vm0, %v6293_v4 }
 0x8b7   :  { %5858 = vmatprep.subr.mxu0 %v6293_v4 }
 0x8bd   :  { %5856 = vmatmul.mubr.f32.vlgmr.msra.gmra.mrb[10].mxu0 %v6626_v60 }
 0x8be   :  { %5859 = vmatpush3.msra.mxu0 %v4453_v17  ;;  %5860 = vmatprep.mubr.msk.f32.mxu0 %vm6292_vm0, %v6293_v4 }
 0x8bf   :  { %5863 = vmatprep.subr.mxu0 %v6293_v4 }
 0x8c5   :  { %5861 = vmatmul.mubr.f32.vlgmr.msra.gmra.mrb[10].mxu0 %v6620_v57 }
 0x8c6   :  { %5864 = vmatpush3.msra.mxu0 %v4375_v28  ;;  %5865 = vmatprep.mubr.msk.f32.mxu0 %vm6292_vm0, %v6293_v4 }
 0x8cd   :  { %5866 = vmatmul.mubr.f32.vlgmr.msra.gmra.mrb[10].mxu0 %v6620_v57 }
 0x9a0   :  { %v4816_v58 = vpop.f32.mrb[10].mxu0 }
 0x9a1   :  { %v7241_v2 = vsub.f32 %v7007_v24, %v4816_v58  ;;  %v5867_v32 = vpop.f32.mrb[11].mxu0 }
 0x9a3   :  { %v4824_v60 = vand.u32 2139095040, %v7241_v2  ;;  %v4821_v37 = vand.u32 2147483647, %v7241_v2  ;;  %vm4823_vm6 = vcmp.lt.s32.totalorder %v7241_v2, 0  ;;  %vm4913_vm1 = vweird.f32 %v7241_v2 }
 0x9a5   :  { %v4825_v40 = vshrl.u32 %v4824_v60, 23  ;;  %v4828_v26 = vand.u32 8388607, %v4821_v37  ;;  %vm4822_vm7 = vcmp.le.f32.partialorder %v4821_v37, 0.7853982 }
 0x9a7   :  { %v5000_v30 = vadd.s32 4294967169, %v4825_v40  ;;  %v4829_v4 = vor.u32 8388608, %v4828_v26 }
 0x9a9   :  { %v4831_v14 = vadd.s32 1, %v5000_v30  ;;  %v4869_v35 = vshll.u32 %v4829_v4, 8 }
 0x9ab   :  { %vm4832_vm13 = vcmp.gt.s32.totalorder %v4831_v14, 0 }
 0x9ac   :  { %v4833_v36 = vsel %vm4832_vm13, %v4831_v14, 0 }
 0x9ad   :  { %v4835_v53 = vand.u32 31, %v4833_v36  ;;  %v4834_v57 = vshrl.u32 %v4833_v36, 5 }
 0x9af   :  { %v4836_v56 = vsub.s32 32, %v4835_v53  ;;  %v4847_v24 = vshll.u32 %v6297_v52, %v4835_v53  ;;  %v4850_v47 = vshll.u32 %v6298_v54, %v4835_v53  ;;  %v4838_v18 = vshll.u32 %v6294_v46, %v4835_v53 }
 0x9b0   :  { %v4841_v3 = vshll.u32 %v6295_v48, %v4835_v53  ;;  %v4844_v41 = vshll.u32 %v6296_v50, %v4835_v53  ;;  %vm4856_vm0 = vcmp.lt.s32.totalorder %v4834_v57, 4  ;;  %vm4853_vm15 = vcmp.lt.s32.totalorder %v4834_v57, 1 }
 0x9b1   :  { %v4848_v12 = vshrl.u32 %v6298_v54, %v4836_v56  ;;  %v4851_v34 = vshrl.u32 %v6299_v61, %v4836_v56  ;;  %v4839_v39 = vshrl.u32 %v6295_v48, %v4836_v56  ;;  %v4842_v20 = vshrl.u32 %v6296_v50, %v4836_v56 }
 0x9b2   :  { %v4845_v6 = vshrl.u32 %v6297_v52, %v4836_v56  ;;  %v4837_v54 = vshrl.u32 %v6294_v46, %v4836_v56  ;;  %vm4854_vm2 = vcmp.lt.s32.totalorder %v4834_v57, 2  ;;  %vm4855_vm3 = vcmp.lt.s32.totalorder %v4834_v57, 3 }
 0x9b3   :  { %v4849_v19 = vor.u32 %v4848_v12, %v4847_v24  ;;  %v4852_v62 = vor.u32 %v4851_v34, %v4850_v47  ;;  %v4840_v13 = vor.u32 %v4839_v39, %v4838_v18  ;;  %v4843_v51 = vor.u32 %v4842_v20, %v4841_v3 }
 0x9b4   :  { %v4846_v61 = vor.u32 %v4845_v6, %v4844_v41 }
 0x9b5   :  { %v4862_v1 = vsel %vm4856_vm0, %v4849_v19, 920167782  ;;  %v4866_v31 = vsel %vm4856_vm0, %v4852_v62, 1326507024  ;;  %v4861_v23 = vsel %vm4853_vm15, %v4840_v13, %v4843_v51  ;;  %v4857_v50 = vsel %vm4853_vm15, %v4837_v54, %v4840_v13 }
 0x9b6   :  { %v4858_v48 = vsel %vm4856_vm0, %v4846_v61, 2102212464  ;;  %v4863_v5 = vsel %vm4855_vm3, %v4846_v61, %v4862_v1  ;;  %v4865_v49 = vsel %vm4853_vm15, %v4843_v51, %v4846_v61  ;;  %v4867_v21 = vsel %vm4855_vm3, %v4849_v19, %v4866_v31 }
 0x9b7   :  { %v4859_v45 = vsel %vm4855_vm3, %v4843_v51, %v4858_v48  ;;  %v4864_v52 = vsel %vm4854_vm2, %v4861_v23, %v4863_v5  ;;  %v4868_v8 = vsel %vm4854_vm2, %v4865_v49, %v4867_v21  ;;  %v4934_v13 = vsel %vm173_vm14, %v6425_v27, %v7214_v63 }
 0x9b8   :  { %v7258_v59 = vmul.u32.u64.low %v4869_v35, %v4864_v52  ;;  %v7259_v7 = vmul.u32.u64.high %v4869_v35, %v4864_v52, %v7258_v59  ;;  %v7261_v46 = vmul.u32.u64.low %v4869_v35, %v4868_v8  ;;  %v7262_v9 = vmul.u32.u64.high %v4869_v35, %v4868_v8, %v7261_v46 }
 0x9b9   :  { %v4860_v22 = vsel %vm4854_vm2, %v4857_v50, %v4859_v45  ;;  %v4936_v54 = vsel %vm4935_vm11, %v4934_v13, %v7212_v0 }
 0x9ba   :  { %v4879_v10 = vadd.s32 1, %v7259_v7  ;;  %v4876_v11 = vmul.u32 %v4869_v35, %v4860_v22  ;;  %vm4878_vm4 = vc.u32 %v7262_v9, %v7258_v59  ;;  %v4877_v55 = vadd.s32 %v7258_v59, %v7262_v9 }
 0x9bc   :  { %v4880_v44 = vsel %vm4878_vm4, %v4879_v10, %v7259_v7 }
 0x9bd   :  { %v4881_v16 = vadd.s32 %v4880_v44, %v4876_v11 }
 0x9bf   :  { %v4882_v28 = vadd.s32 536870912, %v4881_v16 }
 0x9c1   :  { %v4883_v15 = vshrl.u32 %v4882_v28, 30 }
 0x9c3   :  { %v4884_v29 = vshll.u32 %v4883_v15, 30  ;;  %v4907_v47 = vsub.s32 4, %v4883_v15 }
 0x9c5   :  { %v4885_v17 = vsub.s32 %v4881_v16, %v4884_v29  ;;  %v4908_v12 = vsel %vm4823_vm6, %v4907_v47, %v4883_v15 }
 0x9c6   :  { %v4910_v34 = vsel %vm4822_vm7, 0, %v4908_v12 }
 0x9c7   :  { %v4887_v42 = vsub.s32 0, %v4885_v17  ;;  %v4914_v18 = vand.u32 3, %v4910_v34 }
 0x9c9   :  { %v5001_v43 = vmin.u32 %v4887_v42, %v4885_v17  ;;  %vm4919_vm8 = vcmp.eq.s32.totalorder %v4914_v18, 2  ;;  %vm4916_vm9 = vcmp.eq.s32.totalorder %v4914_v18, 0  ;;  %vm4915_vm10 = vcmp.lt.s32.totalorder %v4914_v18, 2 }
 0x9cb   :  { %v4889_v25 = vclz %v5001_v43 }
 0x9cd   :  { %v5002_v33 = vadd.s32 4294967294, %v4889_v25 }
 0x9cf   :  { %vm5003_vm5 = vcmp.lt.s32.totalorder %v5002_v33, 0 }
 0x9d0   :  { %v4892_v38 = vsel %vm5003_vm5, 0, %v5002_v33 }
 0x9d1   :  { %v4893_v58 = vsub.s32 32, %v4892_v38  ;;  %v4897_v32 = vsub.s32 4294967266, %v4892_v38  ;;  %v4894_v60 = vshll.u32 %v4885_v17, %v4892_v38 }
 0x9d3   :  { %v4895_v40 = vshrl.u32 %v4877_v55, %v4893_v58  ;;  %v4898_v30 = vadd.s32 127, %v4897_v32 }
 0x9d5   :  { %v4896_v26 = vor.u32 %v4895_v40, %v4894_v60  ;;  %v4899_v14 = vshll.u32 %v4898_v30, 23 }
 0x9d7   :  { %v4900_v36 = vor.u32 4788187, %v4899_v14  ;;  %v4903_v53 = vcvt.s32.f32 %v4896_v26 }
 0x9d9   :  { %v4901_v4 = vand.u32 2147483647, %v4900_v36 }
 0x9db   :  { %v4904_v57 = vmul.f32 %v4903_v53, %v4901_v4 }
 0x9dd   :  { %v4905_v56 = vxor.u32 2147483648, %v4904_v57 }
 0x9df   :  { %v4906_v24 = vsel %vm4823_vm6, %v4905_v56, %v4904_v57 }
 0x9e0   :  { %v4909_v35 = vsel %vm4822_vm7, %v7241_v2, %v4906_v24 }
 0x9e1   :  { %6287 = vcosq.f32 %v4909_v35 }
 0x9e2   :  { %6289 = vsinq.f32 %v4909_v35 }
 0x9eb   :  { %v6288_v39 = vpop.eup %6287 }
 0x9ec   :  { %v6290_v3 = vpop.eup %6289  ;;  %v4920_v20 = vxor.u32 2147483648, %v6288_v39 }
 0x9ed   :  { %v4917_v41 = vxor.u32 2147483648, %v6290_v3 }
 0x9ee   :  { %v4921_v6 = vsel %vm4919_vm8, %v4920_v20, %v6290_v3 }
 0x9ef   :  { %v4918_v19 = vsel %vm4916_vm9, %v6288_v39, %v4917_v41 }
 0x9f0   :  { %v4922_v37 = vsel %vm4915_vm10, %v4918_v19, %v4921_v6 }
 0x9f1   :  { %v4923_v62 = vsel %vm4913_vm1, nan, %v4922_v37 }
 0x9f2   :  { %4931 = vrot.lane.b32.xlu1 %v4923_v62, %s6305_s9 }
 0xa64   :  { %v4932_v51 = vpop.permute.xlu1 %4931 }
 0xa65   :  { %v4938_v61 = vsel %vm4937_vm12, %v4936_v54, %v4932_v51 }
 0xa66   :  { %4939 = vst [vmem:[%s7286_s4] sm:$0xff] %v4938_v61 }

</bundles_post_ra>
